<compile_context>
chip_gen: v6e
topology: v6e:2x2x1
jax: 0.10.0
libtpu: 0.0.40
codegen_flags: <defaults>
</compile_context>

<pallas_src>
import numpy as np
import jax
import jax.numpy as jnp
from jax.experimental import pallas as pl
from jax.experimental.pallas import tpu as pltpu

INPUT_DIM = 4      # embedding_dim fed to the GNN
HIDDEN_DIM = 32    # hidden_dim
ACTION_DIM = 4     # action_dim
NUM_OBJECTS = 5    # num_objects (K > 1 so the edge model is exercised)


# --------------------------------------------------------------------------- params

def init_params(key, input_dim=INPUT_DIM, hidden_dim=HIDDEN_DIM, action_dim=ACTION_DIM):
    """Deterministic synthetic parameters with torch-module shapes."""
    D, H, A = input_dim, hidden_dim, action_dim
    ks = jax.random.split(key, 6)

    def lin(k, din, dout):
        lim = 1.0 / np.sqrt(din)
        kw, kb = jax.random.split(k)
        w = jax.random.uniform(kw, (din, dout), jnp.float32, -lim, lim)
        b = jax.random.uniform(kb, (dout,), jnp.float32, -lim, lim)
        return w, b

    p = {}
    # edge_mlp: Linear(2D,H) -> ReLU -> Linear(H,H) -> LayerNorm -> ReLU -> Linear(H,H)
    p["w1e"], p["b1e"] = lin(ks[0], 2 * D, H)
    p["w2e"], p["b2e"] = lin(ks[1], H, H)
    p["ge"], p["bte"] = jnp.ones((H,), jnp.float32), jnp.zeros((H,), jnp.float32)
    p["w3e"], p["b3e"] = lin(ks[2], H, H)
    # node_mlp: Linear(D+A+H,H) -> ReLU -> Linear(H,H) -> LayerNorm -> ReLU -> Linear(H,D)
    p["w1n"], p["b1n"] = lin(ks[3], D + A + H, H)
    p["w2n"], p["b2n"] = lin(ks[4], H, H)
    p["gn"], p["btn"] = jnp.ones((H,), jnp.float32), jnp.zeros((H,), jnp.float32)
    p["w3n"], p["b3n"] = lin(ks[5], H, D)
    return p


_TAIL_NAMES = ("w2e", "w3e", "w1n_agg", "w2n", "w3n")


def _tail_offsets(H):
    """Row offsets of each HxH weight inside the packed tail-weight slab."""
    return {n: i * H for i, n in enumerate(_TAIL_NAMES)}


def pack_params(params, input_dim, hidden_dim, action_dim, compute_dtype):
    """Pack weights into a fused first-layer slab, a tail slab and a vector slab."""
    D, H, A = input_dim, hidden_dim, action_dim
    zpad = jnp.zeros((A, H), jnp.float32)

    # Fused first layer: [w1e_src | w1e_tgt | w1n_xa] as one (D+A, 3H) block.
    # The edge weights only see the state columns, so their action rows are zero.
    w1e_src = jnp.concatenate([params["w1e"][:D], zpad], axis=0)          # (D+A, H)
    w1e_tgt = jnp.concatenate([params["w1e"][D:], zpad], axis=0)          # (D+A, H)
    w1n_xa = params["w1n"][:D + A]                                        # (D+A, H)
    w_first = jnp.concatenate([w1e_src, w1e_tgt, w1n_xa], axis=1)         # (D+A, 3H)
    w_first = w_first.astype(compute_dtype)

    tail_pieces = {
        "w2e": params["w2e"],
        "w3e": params["w3e"],
        "w1n_agg": params["w1n"][D + A:],                                 # (H, H)
        "w2n": params["w2n"],
        "w3n": jnp.pad(params["w3n"], ((0, 0), (0, H - params["w3n"].shape[1]))),
    }
    w_tail = jnp.concatenate([tail_pieces[n] for n in _TAIL_NAMES], axis=0)
    w_tail = w_tail.astype(compute_dtype)
    assert w_tail.shape == (len(_TAIL_NAMES) * H, H)

    def as_row(v):
        v = jnp.asarray(v, jnp.float32).reshape(1, -1)
        return jnp.pad(v, ((0, 0), (0, H - v.shape[1])))

    v_slab = jnp.concatenate(
        [as_row(params[n]) for n in
         ("b1e", "b2e", "ge", "bte", "b3e", "b1n", "b2n", "gn", "btn", "b3n")],
        axis=0)                                                           # (10, H) f32
    return w_first, w_tail, v_slab


# --------------------------------------------------------------------------- kernel

def _make_gnn_kernel(K, Bt, D, A, H, compute_dtype, out_lanes):
    F = D + A
    N = K * Bt                       # rows per tile, object-major: row = k*Bt + b
    offs = _tail_offsets(H)
    exact_f32 = jnp.dtype(compute_dtype) == jnp.dtype(jnp.float32)
    precision = jax.lax.Precision.HIGHEST if exact_f32 else None

    def kernel(xa_ref, wf_ref, wt_ref, v_ref, out_ref):
        f32 = jnp.float32
        cdt = compute_dtype

        def mdot(a, b):
            return jnp.dot(a, b, preferred_element_type=f32, precision=precision)

        def tload(name):
            o = offs[name]
            return wt_ref[o:o + H, :]

        xa = xa_ref[...]                                   # (N, D+A), compute dtype
        v = v_ref[...]                                     # (10, H), float32
        b1e, b2e, g_e, bt_e, b3e = v[0:1], v[1:2], v[2:3], v[3:4], v[4:5]
        b1n, b2n, g_n, bt_n, b3n = v[5:6], v[6:7], v[7:8], v[8:9], v[9:10]

        def layer_norm(h, g, b):                           # torch LayerNorm, eps=1e-5, f32
            mu = jnp.mean(h, axis=-1, keepdims=True)
            var = jnp.mean((h - mu) ** 2, axis=-1, keepdims=True)
            return (h - mu) * jax.lax.rsqrt(var + 1e-5) * g + b

        def mlp_tail(h, w2, b2, g, bt, w3, b3):
            # ReLU -> Linear -> LayerNorm -> ReLU -> Linear   (accumulate in f32)
            h = jnp.maximum(h, 0.0)
            h = mdot(h.astype(cdt), w2) + b2
            h = jnp.maximum(layer_norm(h, g, bt), 0.0)
            return mdot(h.astype(cdt), w3) + b3

        # ---- one fused MXU pass for every xa-consuming first-layer projection.
        fused = mdot(xa, wf_ref[...])                      # (N, 3H) f32
        src_h = fused[:, 0:H] + b1e                        # edge source proj (+ bias once)
        tgt_h = fused[:, H:2 * H]                          # edge target proj
        xa_n = fused[:, 2 * H:3 * H]                       # node [x | action] proj

        # ---- edge model: K-1 relative object offsets stacked into one batch.
        # Source row (k, b) pairs with object (k + d) % K of the same batch
        # element, i.e. tgt_h rotated by d*Bt rows.
        pieces = []
        for d in range(1, K):
            pieces.append(tgt_h[d * Bt:, :])
            pieces.append(tgt_h[:d * Bt, :])
        tgt_stack = jnp.concatenate(pieces, axis=0)                 # ((K-1)*N, H)
        src_stack = jnp.concatenate([src_h] * (K - 1), axis=0)      # ((K-1)*N, H)

        edge_out = mlp_tail(src_stack + tgt_stack,
                            tload("w2e"), b2e, g_e, bt_e, tload("w3e"), b3e)

        # per-source aggregate = sum over the K-1 offset blocks
        agg = edge_out[0:N, :]
        for d in range(1, K - 1):
            agg = agg + edge_out[d * N:(d + 1) * N, :]

        # ---- node model
        h = xa_n + mdot(agg.astype(cdt), tload("w1n_agg")) + b1n
        node_out = mlp_tail(h, tload("w2n"), b2n, g_n, bt_n, tload("w3n"), b3n)
        # (w3n / b3n are zero-padded past column D, so node_out[:, D:] == 0)

        # ---- lane-dense, 128-lane padded output: one row per batch element.
        chunks = [node_out[k * Bt:(k + 1) * Bt, 0:D] for k in range(K)]
        pad = out_lanes - K * D
        if pad:
            chunks.append(jnp.zeros((Bt, pad), f32))
        out_ref[...] = jnp.concatenate(chunks, axis=1).astype(out_ref.dtype)

    return kernel


def _pick_b_tile(batch, cap=256, min_tiles=1):
    """Largest multiple-of-16 divisor of `batch` (bf16 sublane packing) that keeps
    at least `min_tiles` grid tiles; falls back to multiples of 8, then to a
    single whole-batch tile.  Pass min_tiles=2 on v7x so both TensorCores get
    work (v5e/v6e have a single TensorCore, where one big tile is optimal)."""
    limit = min(cap, batch // max(min_tiles, 1))
    for step in (16, 8):
        start = limit - (limit % step)
        for t in range(start, 0, -step):
            if batch % t == 0:
                return t
    return batch


def transition_gnn_forward(states, action, params, *,
                           input_dim=INPUT_DIM, hidden_dim=HIDDEN_DIM,
                           action_dim=ACTION_DIM,
                           compute_dtype=jnp.bfloat16, b_tile=None, min_tiles=1):
    """TransitionGNN forward, ignore_action=False / copy_action=False / relu."""
    B, K, D = states.shape
    A, H = action_dim, hidden_dim
    F = D + A
    assert D == input_dim and K > 1

    Bt = _pick_b_tile(B, min_tiles=min_tiles) if b_tile is None else b_tile
    T = B // Bt
    assert B == T * Bt and (T == 1 or Bt % 8 == 0), \
        "batch tile must keep blocks 8-row aligned when the grid has >1 tile"
    N = K * Bt
    out_lanes = ((K * D + 127) // 128) * 128               # lane-padded output width

    w_first, w_tail, v_slab = pack_params(params, D, H, A, compute_dtype)

    # copy_action=False: one_hot(action, A*K).view(-1, A)
    act_vec = jax.nn.one_hot(action, A * K, dtype=jnp.float32).reshape(B, K, A)
    xa = jnp.concatenate([states.astype(jnp.float32), act_vec], axis=-1)     # (B, K, D+A)
    # per-tile object-major rows: row index = tile*K*Bt + object*Bt + batch_in_tile
    xa = (xa.reshape(T, Bt, K, F).transpose(0, 2, 1, 3)
            .reshape(T * N, F).astype(compute_dtype))

    kernel = _make_gnn_kernel(K, Bt, D, A, H, compute_dtype, out_lanes)
    out = pl.pallas_call(
        kernel,
        out_shape=jax.ShapeDtypeStruct((B, out_lanes), jnp.float32),
        grid=(T,),
        in_specs=[
            pl.BlockSpec((N, F), lambda i: (i, 0)),            # node+action tile
            pl.BlockSpec(w_first.shape, lambda i: (0, 0)),     # fused first-layer weights
            pl.BlockSpec(w_tail.shape, lambda i: (0, 0)),      # tail weights (resident)
            pl.BlockSpec(v_slab.shape, lambda i: (0, 0)),      # biases / LayerNorm params
        ],
        out_specs=pl.BlockSpec((Bt, out_lanes), lambda i: (i, 0)),
        compiler_params=pltpu.CompilerParams(
            dimension_semantics=("parallel",),
            vmem_limit_bytes=32 * 1024 * 1024),
    )(xa, w_first, w_tail, v_slab)

    return out[:, :K * D].reshape(B, K, D)


# --------------------------------------------------------------------------- reference

def reference_forward(states, action, params, action_dim=ACTION_DIM):
    """Pure-JAX mirror of the torch TransitionGNN forward (explicit edge list)."""
    B, K, D = states.shape
    H = params["w2e"].shape[0]
    x = states.reshape(B * K, D).astype(jnp.float32)

    adj = np.ones((K, K)) - np.eye(K)
    src, tgt = np.nonzero(adj)                                  # row-major (i, j), j != i
    offset = np.repeat(np.arange(B) * K, K * (K - 1))
    row = jnp.asarray(np.tile(src, B) + offset, jnp.int32)
    col = jnp.asarray(np.tile(tgt, B) + offset, jnp.int32)

    def ln(h, g, b):
        mu = h.mean(-1, keepdims=True)
        var = ((h - mu) ** 2).mean(-1, keepdims=True)
        return (h - mu) * jax.lax.rsqrt(var + 1e-5) * g + b

    with jax.default_matmul_precision("highest"):
        e = jnp.concatenate([x[row], x[col]], axis=1)
        h = jax.nn.relu(e @ params["w1e"] + params["b1e"])
        h = h @ params["w2e"] + params["b2e"]
        h = jax.nn.relu(ln(h, params["ge"], params["bte"]))
        edge_attr = h @ params["w3e"] + params["b3e"]

        agg = jnp.zeros((B * K, H), jnp.float32).at[row].add(edge_attr)
        act_vec = jax.nn.one_hot(action, action_dim * K, dtype=jnp.float32)
        act_vec = act_vec.reshape(B * K, action_dim)
        n = jnp.concatenate([x, act_vec, agg], axis=1)
        h = jax.nn.relu(n @ params["w1n"] + params["b1n"])
        h = h @ params["w2n"] + params["b2n"]
        h = jax.nn.relu(ln(h, params["gn"], params["btn"]))
        out = h @ params["w3n"] + params["b3n"]
    return out.reshape(B, K, D)


# --------------------------------------------------------------------------- main

if __name__ == "__main__":
    key = jax.random.PRNGKey(0)
    kp, ks1, ka1, ks2, ka2 = jax.random.split(key, 5)
    params = init_params(kp)

    # Run 1: tiny batch, exact-f32 path (precision=HIGHEST matmuls), single tile.
    B1 = 2
    states1 = jax.random.normal(ks1, (B1, NUM_OBJECTS, INPUT_DIM), jnp.float32)
    action1 = jax.random.randint(ka1, (B1,), 0, ACTION_DIM * NUM_OBJECTS)
    out1 = transition_gnn_forward(states1, action1, params, compute_dtype=jnp.float32)
    jax.block_until_ready(out1)
    ref1 = reference_forward(states1, action1, params)
    err1 = float(jnp.max(jnp.abs(out1 - ref1)))
    assert out1.shape == (B1, NUM_OBJECTS, INPUT_DIM)
    assert bool(jnp.all(jnp.isfinite(out1)))
    assert err1 < 2e-3, f"f32 kernel mismatch vs reference: {err1}"

    # Run 2: multi-tile grid (2 batch tiles of 16 -> both v7x TensorCores busy,
    # tiles 16-row aligned for bf16 sublane packing), bf16 matmuls, f32 accumulation.
    B2 = 32
    states2 = jax.random.normal(ks2, (B2, NUM_OBJECTS, INPUT_DIM), jnp.float32)
    action2 = jax.random.randint(ka2, (B2,), 0, ACTION_DIM * NUM_OBJECTS)
    out2 = transition_gnn_forward(states2, action2, params,
                                  compute_dtype=jnp.bfloat16, b_tile=16)
    jax.block_until_ready(out2)
    ref2 = reference_forward(states2, action2, params)
    err2 = float(jnp.max(jnp.abs(out2 - ref2)))
    assert out2.shape == (B2, NUM_OBJECTS, INPUT_DIM)
    assert bool(jnp.all(jnp.isfinite(out2)))
    assert err2 < 1e-1, f"bf16 kernel mismatch vs reference: {err2}"

    print("KERNEL_OK")
</pallas_src>

<mosaic_0001>
module attributes {stable_mosaic.version = 11 : i64} {
  func.func @kernel(%arg0: i32, %arg1: memref<10x8xf32, #tpu.memory_space<vmem>>, %arg2: memref<8x96xf32, #tpu.memory_space<vmem>>, %arg3: memref<160x32xf32, #tpu.memory_space<vmem>>, %arg4: memref<10x32xf32, #tpu.memory_space<vmem>>, %arg5: memref<2x128xf32, #tpu.memory_space<vmem>>) attributes {dimension_semantics = [#tpu.dimension_semantics<parallel>], iteration_bounds = array<i64: 1>, scalar_prefetch = 0 : i64, scratch_operands = 0 : i64, tpu.core_type = #tpu.core_type<tc>, window_params = [{transform_indices = @transform_0, window_bounds = array<i64: 10, 8>}, {pipeline_mode = #tpu.pipeline_mode<synchronous>, transform_indices = @transform_1, window_bounds = array<i64: 8, 96>}, {pipeline_mode = #tpu.pipeline_mode<synchronous>, transform_indices = @transform_2, window_bounds = array<i64: 160, 32>}, {pipeline_mode = #tpu.pipeline_mode<synchronous>, transform_indices = @transform_3, window_bounds = array<i64: 10, 32>}, {transform_indices = @transform_4, window_bounds = array<i64: 2, 128>}]} {
    %c0 = arith.constant 0 : index
    %c0_0 = arith.constant 0 : index
    %0 = vector.load %arg1[%c0, %c0_0] : memref<10x8xf32, #tpu.memory_space<vmem>>, vector<10x8xf32>
    %c0_1 = arith.constant 0 : index
    %c0_2 = arith.constant 0 : index
    %1 = vector.load %arg4[%c0_1, %c0_2] : memref<10x32xf32, #tpu.memory_space<vmem>>, vector<10x32xf32>
    %2 = vector.extract_strided_slice %1 {offsets = [0, 0], sizes = [1, 32], strides = [1, 1]} : vector<10x32xf32> to vector<1x32xf32>
    %3 = vector.extract_strided_slice %1 {offsets = [1, 0], sizes = [1, 32], strides = [1, 1]} : vector<10x32xf32> to vector<1x32xf32>
    %4 = vector.extract_strided_slice %1 {offsets = [2, 0], sizes = [1, 32], strides = [1, 1]} : vector<10x32xf32> to vector<1x32xf32>
    %5 = vector.extract_strided_slice %1 {offsets = [3, 0], sizes = [1, 32], strides = [1, 1]} : vector<10x32xf32> to vector<1x32xf32>
    %6 = vector.extract_strided_slice %1 {offsets = [4, 0], sizes = [1, 32], strides = [1, 1]} : vector<10x32xf32> to vector<1x32xf32>
    %7 = vector.extract_strided_slice %1 {offsets = [5, 0], sizes = [1, 32], strides = [1, 1]} : vector<10x32xf32> to vector<1x32xf32>
    %8 = vector.extract_strided_slice %1 {offsets = [6, 0], sizes = [1, 32], strides = [1, 1]} : vector<10x32xf32> to vector<1x32xf32>
    %9 = vector.extract_strided_slice %1 {offsets = [7, 0], sizes = [1, 32], strides = [1, 1]} : vector<10x32xf32> to vector<1x32xf32>
    %10 = vector.extract_strided_slice %1 {offsets = [8, 0], sizes = [1, 32], strides = [1, 1]} : vector<10x32xf32> to vector<1x32xf32>
    %11 = vector.extract_strided_slice %1 {offsets = [9, 0], sizes = [1, 32], strides = [1, 1]} : vector<10x32xf32> to vector<1x32xf32>
    %c0_3 = arith.constant 0 : index
    %c0_4 = arith.constant 0 : index
    %12 = vector.load %arg2[%c0_3, %c0_4] : memref<8x96xf32, #tpu.memory_space<vmem>>, vector<8x96xf32>
    %cst = arith.constant dense<0.000000e+00> : vector<10x96xf32>
    %13 = tpu.matmul %0, %12, %cst {dimension_numbers = #tpu.dot_dimension_numbers<[1], [0], [0], [1], [0, 0, 1, 1], [], []>, precision = #tpu.contract_precision<fp32>} : vector<10x8xf32>, vector<8x96xf32>, vector<10x96xf32> -> vector<10x96xf32>
    %14 = vector.extract_strided_slice %13 {offsets = [0, 0], sizes = [10, 32], strides = [1, 1]} : vector<10x96xf32> to vector<10x32xf32>
    %15 = vector.broadcast %2 : vector<1x32xf32> to vector<10x32xf32>
    %16 = arith.addf %14, %15 : vector<10x32xf32>
    %17 = vector.extract_strided_slice %13 {offsets = [0, 32], sizes = [10, 32], strides = [1, 1]} : vector<10x96xf32> to vector<10x32xf32>
    %18 = vector.extract_strided_slice %13 {offsets = [0, 64], sizes = [10, 32], strides = [1, 1]} : vector<10x96xf32> to vector<10x32xf32>
    %19 = vector.extract_strided_slice %17 {offsets = [2, 0], sizes = [8, 32], strides = [1, 1]} : vector<10x32xf32> to vector<8x32xf32>
    %20 = vector.extract_strided_slice %17 {offsets = [0, 0], sizes = [2, 32], strides = [1, 1]} : vector<10x32xf32> to vector<2x32xf32>
    %21 = vector.extract_strided_slice %17 {offsets = [4, 0], sizes = [6, 32], strides = [1, 1]} : vector<10x32xf32> to vector<6x32xf32>
    %22 = vector.extract_strided_slice %17 {offsets = [0, 0], sizes = [4, 32], strides = [1, 1]} : vector<10x32xf32> to vector<4x32xf32>
    %23 = vector.extract_strided_slice %17 {offsets = [6, 0], sizes = [4, 32], strides = [1, 1]} : vector<10x32xf32> to vector<4x32xf32>
    %24 = vector.extract_strided_slice %17 {offsets = [0, 0], sizes = [6, 32], strides = [1, 1]} : vector<10x32xf32> to vector<6x32xf32>
    %25 = vector.extract_strided_slice %17 {offsets = [8, 0], sizes = [2, 32], strides = [1, 1]} : vector<10x32xf32> to vector<2x32xf32>
    %26 = vector.extract_strided_slice %17 {offsets = [0, 0], sizes = [8, 32], strides = [1, 1]} : vector<10x32xf32> to vector<8x32xf32>
    %27 = tpu.concatenate %19, %20, %21, %22, %23, %24, %25, %26 in 0 : vector<8x32xf32>, vector<2x32xf32>, vector<6x32xf32>, vector<4x32xf32>, vector<4x32xf32>, vector<6x32xf32>, vector<2x32xf32>, vector<8x32xf32> -> vector<40x32xf32>
    %28 = tpu.concatenate %16, %16, %16, %16 in 0 : vector<10x32xf32>, vector<10x32xf32>, vector<10x32xf32>, vector<10x32xf32> -> vector<40x32xf32>
    %29 = arith.addf %28, %27 : vector<40x32xf32>
    %c0_5 = arith.constant 0 : index
    %c0_6 = arith.constant 0 : index
    %30 = vector.load %arg3[%c0_5, %c0_6] : memref<160x32xf32, #tpu.memory_space<vmem>>, vector<32x32xf32>
    %c32 = arith.constant 32 : index
    %c0_7 = arith.constant 0 : index
    %31 = vector.load %arg3[%c32, %c0_7] : memref<160x32xf32, #tpu.memory_space<vmem>>, vector<32x32xf32>
    %cst_8 = arith.constant 0.000000e+00 : f32
    %32 = vector.broadcast %cst_8 : f32 to vector<40x32xf32>
    %33 = arith.maximumf %29, %32 : vector<40x32xf32>
    %cst_9 = arith.constant dense<0.000000e+00> : vector<40x32xf32>
    %34 = tpu.matmul %33, %30, %cst_9 {dimension_numbers = #tpu.dot_dimension_numbers<[1], [0], [0], [1], [0, 0, 1, 1], [], []>, precision = #tpu.contract_precision<fp32>} : vector<40x32xf32>, vector<32x32xf32>, vector<40x32xf32> -> vector<40x32xf32>
    %35 = vector.broadcast %3 : vector<1x32xf32> to vector<40x32xf32>
    %36 = arith.addf %34, %35 : vector<40x32xf32>
    %cst_10 = arith.constant dense<0.000000e+00> : vector<40xf32>
    %37 = vector.multi_reduction <add>, %36, %cst_10 [1] : vector<40x32xf32> to vector<40xf32>
    %38 = vector.shape_cast %37 : vector<40xf32> to vector<40x1xf32>
    %cst_11 = arith.constant 3.200000e+01 : f32
    %39 = vector.broadcast %cst_11 : f32 to vector<40x1xf32>
    %40 = arith.divf %38, %39 : vector<40x1xf32>
    %41 = vector.broadcast %40 : vector<40x1xf32> to vector<40x32xf32>
    %42 = arith.subf %36, %41 : vector<40x32xf32>
    %43 = arith.mulf %42, %42 : vector<40x32xf32>
    %cst_12 = arith.constant dense<0.000000e+00> : vector<40xf32>
    %44 = vector.multi_reduction <add>, %43, %cst_12 [1] : vector<40x32xf32> to vector<40xf32>
    %45 = vector.shape_cast %44 : vector<40xf32> to vector<40x1xf32>
    %cst_13 = arith.constant 3.200000e+01 : f32
    %46 = vector.broadcast %cst_13 : f32 to vector<40x1xf32>
    %47 = arith.divf %45, %46 : vector<40x1xf32>
    %48 = vector.broadcast %40 : vector<40x1xf32> to vector<40x32xf32>
    %49 = arith.subf %36, %48 : vector<40x32xf32>
    %cst_14 = arith.constant 9.99999974E-6 : f32
    %50 = vector.broadcast %cst_14 : f32 to vector<40x1xf32>
    %51 = arith.addf %47, %50 : vector<40x1xf32>
    %52 = math.rsqrt %51 : vector<40x1xf32>
    %53 = vector.broadcast %52 : vector<40x1xf32> to vector<40x32xf32>
    %54 = arith.mulf %49, %53 : vector<40x32xf32>
    %55 = vector.broadcast %4 : vector<1x32xf32> to vector<40x32xf32>
    %56 = arith.mulf %54, %55 : vector<40x32xf32>
    %57 = vector.broadcast %5 : vector<1x32xf32> to vector<40x32xf32>
    %58 = arith.addf %56, %57 : vector<40x32xf32>
    %cst_15 = arith.constant 0.000000e+00 : f32
    %59 = vector.broadcast %cst_15 : f32 to vector<40x32xf32>
    %60 = arith.maximumf %58, %59 : vector<40x32xf32>
    %cst_16 = arith.constant dense<0.000000e+00> : vector<40x32xf32>
    %61 = tpu.matmul %60, %31, %cst_16 {dimension_numbers = #tpu.dot_dimension_numbers<[1], [0], [0], [1], [0, 0, 1, 1], [], []>, precision = #tpu.contract_precision<fp32>} : vector<40x32xf32>, vector<32x32xf32>, vector<40x32xf32> -> vector<40x32xf32>
    %62 = vector.broadcast %6 : vector<1x32xf32> to vector<40x32xf32>
    %63 = arith.addf %61, %62 : vector<40x32xf32>
    %64 = vector.extract_strided_slice %63 {offsets = [0, 0], sizes = [10, 32], strides = [1, 1]} : vector<40x32xf32> to vector<10x32xf32>
    %65 = vector.extract_strided_slice %63 {offsets = [10, 0], sizes = [10, 32], strides = [1, 1]} : vector<40x32xf32> to vector<10x32xf32>
    %66 = arith.addf %64, %65 : vector<10x32xf32>
    %67 = vector.extract_strided_slice %63 {offsets = [20, 0], sizes = [10, 32], strides = [1, 1]} : vector<40x32xf32> to vector<10x32xf32>
    %68 = arith.addf %66, %67 : vector<10x32xf32>
    %69 = vector.extract_strided_slice %63 {offsets = [30, 0], sizes = [10, 32], strides = [1, 1]} : vector<40x32xf32> to vector<10x32xf32>
    %70 = arith.addf %68, %69 : vector<10x32xf32>
    %c64 = arith.constant 64 : index
    %c0_17 = arith.constant 0 : index
    %71 = vector.load %arg3[%c64, %c0_17] : memref<160x32xf32, #tpu.memory_space<vmem>>, vector<32x32xf32>
    %cst_18 = arith.constant dense<0.000000e+00> : vector<10x32xf32>
    %72 = tpu.matmul %70, %71, %cst_18 {dimension_numbers = #tpu.dot_dimension_numbers<[1], [0], [0], [1], [0, 0, 1, 1], [], []>, precision = #tpu.contract_precision<fp32>} : vector<10x32xf32>, vector<32x32xf32>, vector<10x32xf32> -> vector<10x32xf32>
    %73 = arith.addf %18, %72 : vector<10x32xf32>
    %74 = vector.broadcast %7 : vector<1x32xf32> to vector<10x32xf32>
    %75 = arith.addf %73, %74 : vector<10x32xf32>
    %c96 = arith.constant 96 : index
    %c0_19 = arith.constant 0 : index
    %76 = vector.load %arg3[%c96, %c0_19] : memref<160x32xf32, #tpu.memory_space<vmem>>, vector<32x32xf32>
    %c128 = arith.constant 128 : index
    %c0_20 = arith.constant 0 : index
    %77 = vector.load %arg3[%c128, %c0_20] : memref<160x32xf32, #tpu.memory_space<vmem>>, vector<32x32xf32>
    %cst_21 = arith.constant 0.000000e+00 : f32
    %78 = vector.broadcast %cst_21 : f32 to vector<10x32xf32>
    %79 = arith.maximumf %75, %78 : vector<10x32xf32>
    %cst_22 = arith.constant dense<0.000000e+00> : vector<10x32xf32>
    %80 = tpu.matmul %79, %76, %cst_22 {dimension_numbers = #tpu.dot_dimension_numbers<[1], [0], [0], [1], [0, 0, 1, 1], [], []>, precision = #tpu.contract_precision<fp32>} : vector<10x32xf32>, vector<32x32xf32>, vector<10x32xf32> -> vector<10x32xf32>
    %81 = vector.broadcast %8 : vector<1x32xf32> to vector<10x32xf32>
    %82 = arith.addf %80, %81 : vector<10x32xf32>
    %cst_23 = arith.constant dense<0.000000e+00> : vector<10xf32>
    %83 = vector.multi_reduction <add>, %82, %cst_23 [1] : vector<10x32xf32> to vector<10xf32>
    %84 = vector.shape_cast %83 : vector<10xf32> to vector<10x1xf32>
    %cst_24 = arith.constant 3.200000e+01 : f32
    %85 = vector.broadcast %cst_24 : f32 to vector<10x1xf32>
    %86 = arith.divf %84, %85 : vector<10x1xf32>
    %87 = vector.broadcast %86 : vector<10x1xf32> to vector<10x32xf32>
    %88 = arith.subf %82, %87 : vector<10x32xf32>
    %89 = arith.mulf %88, %88 : vector<10x32xf32>
    %cst_25 = arith.constant dense<0.000000e+00> : vector<10xf32>
    %90 = vector.multi_reduction <add>, %89, %cst_25 [1] : vector<10x32xf32> to vector<10xf32>
    %91 = vector.shape_cast %90 : vector<10xf32> to vector<10x1xf32>
    %cst_26 = arith.constant 3.200000e+01 : f32
    %92 = vector.broadcast %cst_26 : f32 to vector<10x1xf32>
    %93 = arith.divf %91, %92 : vector<10x1xf32>
    %94 = vector.broadcast %86 : vector<10x1xf32> to vector<10x32xf32>
    %95 = arith.subf %82, %94 : vector<10x32xf32>
    %cst_27 = arith.constant 9.99999974E-6 : f32
    %96 = vector.broadcast %cst_27 : f32 to vector<10x1xf32>
    %97 = arith.addf %93, %96 : vector<10x1xf32>
    %98 = math.rsqrt %97 : vector<10x1xf32>
    %99 = vector.broadcast %98 : vector<10x1xf32> to vector<10x32xf32>
    %100 = arith.mulf %95, %99 : vector<10x32xf32>
    %101 = vector.broadcast %9 : vector<1x32xf32> to vector<10x32xf32>
    %102 = arith.mulf %100, %101 : vector<10x32xf32>
    %103 = vector.broadcast %10 : vector<1x32xf32> to vector<10x32xf32>
    %104 = arith.addf %102, %103 : vector<10x32xf32>
    %cst_28 = arith.constant 0.000000e+00 : f32
    %105 = vector.broadcast %cst_28 : f32 to vector<10x32xf32>
    %106 = arith.maximumf %104, %105 : vector<10x32xf32>
    %cst_29 = arith.constant dense<0.000000e+00> : vector<10x32xf32>
    %107 = tpu.matmul %106, %77, %cst_29 {dimension_numbers = #tpu.dot_dimension_numbers<[1], [0], [0], [1], [0, 0, 1, 1], [], []>, precision = #tpu.contract_precision<fp32>} : vector<10x32xf32>, vector<32x32xf32>, vector<10x32xf32> -> vector<10x32xf32>
    %108 = vector.broadcast %11 : vector<1x32xf32> to vector<10x32xf32>
    %109 = arith.addf %107, %108 : vector<10x32xf32>
    %110 = vector.extract_strided_slice %109 {offsets = [0, 0], sizes = [2, 4], strides = [1, 1]} : vector<10x32xf32> to vector<2x4xf32>
    %111 = vector.extract_strided_slice %109 {offsets = [2, 0], sizes = [2, 4], strides = [1, 1]} : vector<10x32xf32> to vector<2x4xf32>
    %112 = vector.extract_strided_slice %109 {offsets = [4, 0], sizes = [2, 4], strides = [1, 1]} : vector<10x32xf32> to vector<2x4xf32>
    %113 = vector.extract_strided_slice %109 {offsets = [6, 0], sizes = [2, 4], strides = [1, 1]} : vector<10x32xf32> to vector<2x4xf32>
    %114 = vector.extract_strided_slice %109 {offsets = [8, 0], sizes = [2, 4], strides = [1, 1]} : vector<10x32xf32> to vector<2x4xf32>
    %cst_30 = arith.constant 0.000000e+00 : f32
    %115 = vector.broadcast %cst_30 : f32 to vector<2x108xf32>
    %116 = tpu.concatenate %110, %111, %112, %113, %114, %115 in 1 : vector<2x4xf32>, vector<2x4xf32>, vector<2x4xf32>, vector<2x4xf32>, vector<2x4xf32>, vector<2x108xf32> -> vector<2x128xf32>
    %c0_31 = arith.constant 0 : index
    %c0_32 = arith.constant 0 : index
    %117 = vector.load %arg5[%c0_31, %c0_32] : memref<2x128xf32, #tpu.memory_space<vmem>>, vector<2x128xf32>
    tpu.vector_store %arg5[%c0_31, %c0_32], %116 {strides = array<i32>} : memref<2x128xf32, #tpu.memory_space<vmem>>, vector<2x128xf32>,
    return
  }
  func.func @transform_0(%arg0: i32) -> (i32, i32) {
    %c0_i32 = arith.constant 0 : i32
    %c0_i32_0 = arith.constant 0 : i32
    return %arg0, %c0_i32 : i32, i32
  }
  func.func @transform_1(%arg0: i32) -> (i32, i32) {
    %c0_i32 = arith.constant 0 : i32
    %c0_i32_0 = arith.constant 0 : i32
    %c0_i32_1 = arith.constant 0 : i32
    return %c0_i32, %c0_i32_0 : i32, i32
  }
  func.func @transform_2(%arg0: i32) -> (i32, i32) {
    %c0_i32 = arith.constant 0 : i32
    %c0_i32_0 = arith.constant 0 : i32
    %c0_i32_1 = arith.constant 0 : i32
    return %c0_i32, %c0_i32_0 : i32, i32
  }
  func.func @transform_3(%arg0: i32) -> (i32, i32) {
    %c0_i32 = arith.constant 0 : i32
    %c0_i32_0 = arith.constant 0 : i32
    %c0_i32_1 = arith.constant 0 : i32
    return %c0_i32, %c0_i32_0 : i32, i32
  }
  func.func @transform_4(%arg0: i32) -> (i32, i32) {
    %c0_i32 = arith.constant 0 : i32
    %c0_i32_0 = arith.constant 0 : i32
    return %arg0, %c0_i32 : i32, i32
  }
}

</mosaic_0001>

<bundles_post_ra>
// kernel: tpu_custom_call.1
= control target key start
LH: loop header
LB: loop body
LE: loop exit
PB: predicated region body
PF: predicated region fallthrough
CT: control target
= control target key end

     0   :  { %vm23_vm0 = vcmask 64512   ;;  %s5450_s0 = inlined_call_operand.vmem [shape: f32[10,8], index: 0, kind: input, shape index: {}]   ;;  %s5451_s1 = inlined_call_operand.vmem [shape: f32[8,96], index: 1, kind: input, shape index: {}]   ;;  %s5452_s2 = inlined_call_operand.vmem [shape: f32[160,32], index: 2, kind: input, shape index: {}]   ;;  %s5453_s3 = inlined_call_operand.vmem [shape: f32[10,32], index: 3, kind: input, shape index: {}]   ;;  %s5454_s4 = inlined_call_operand.hbm [shape: f32[2,128], index: 4, kind: output, shape index: {}]  }
   0x1   :  { %v22_v0 = vld [vmem:[%s5451_s1] sm:$0xff]  ;;  %v19_v2 = vld [vmem:[%s5450_s0 + $0x8] sm:$0x3] }
   0x2   :  { %v18_v1 = vld [vmem:[%s5450_s0] sm:$0xff]  ;;  %v61_v3 = vand.u32 4294901760, %v22_v0  ;;  %v28_v5 = vsel %vm23_vm0, %v19_v2, 0 }
   0x3   :  { %v25_v4 = vsel %vm23_vm0, %v18_v1, 0 }
   0x4   :  { %9 = vsyncpa [#allocation3], 0  ;;  %v96_v6 = vand.u32 4294901760, %v25_v4  ;;  %v106_v7 = vand.u32 4294901760, %v28_v5  ;;  %4025 = vmatprep.subr.mxu0 %v61_v3  ;;  %v148_v8 = vsub.f32 %v22_v0, %v61_v3  ;;  %v4575_v20 = vmov 0.0   ;;  %v584_v21 = vld [vmem:[%s5452_s2 + $0x18] sm:$0xff] }
   0x5   :  { %4026 = vmatpush3.msra.mxu0 %v61_v3  ;;  %v4625_v22 = vand.u32 4294901760, %v584_v21  ;;  %v583_v23 = vld [vmem:[%s5452_s2 + $0x10] sm:$0xff]  ;;  %v582_v26 = vld [vmem:[%s5452_s2 + $0x8] sm:$0xff]  ;;  %v581_v35 = vld [vmem:[%s5452_s2] sm:$0xff]  ;;  %vm4576_vm1 = vmmov 0   ;;  %vm535_vm2 = vcmask 1043456  }
   0x6   :  { %v97_v9 = vsub.f32 %v25_v4, %v96_v6  ;;  %4032 = vmatprep.mubr.f32.mxu1 %v96_v6  ;;  %v107_v10 = vsub.f32 %v28_v5, %v106_v7  ;;  %v149_v11 = vand.u32 4294901760, %v148_v8  ;;  %4035 = vmatprep.subr.mxu0 %v148_v8  ;;  %v4633_v25 = vand.u32 4294901760, %v583_v23  ;;  %s4577_s27 = smov 96   ;;  %s4578_s26 = smov 64  }
   0x7   :  { %v4631_v24 = vsub.f32 %v584_v21, %v4625_v22  ;;  %v4644_v29 = vand.u32 4294901760, %v582_v26  ;;  %v4659_v38 = vand.u32 4294901760, %v581_v35  ;;  %vm527_vm3 = vcmask 1045504   ;;  %s4580_s12 = smov 4   ;;  %s4581_s13 = smov 12  }
   0x8   :  { %v98_v12 = vand.u32 4294901760, %v97_v9  ;;  %v108_v13 = vand.u32 4294901760, %v107_v10  ;;  %v150_v14 = vsub.f32 %v148_v8, %v149_v11  ;;  %v4642_v28 = vsub.f32 %v583_v23, %v4633_v25  ;;  %s4582_s14 = smov 16   ;;  %s4583_s15 = smov [#allocation2]  }
   0x9   :  { %v760_v27 = vand.u32 4294901760, %v4631_v24  ;;  %v4653_v34 = vsub.f32 %v582_v26, %v4644_v29  ;;  %v4667_v45 = vsub.f32 %v581_v35, %v4659_v38  ;;  %vm533_vm4 = vcmask 1041408   ;;  %s3783_s16 = sshll.u32 %s4583_s15, 4  ;;  %s3784_s16 = int_to_ptr.vmem [resolvable:$true] %s3783_s16 }
   0xa   :  { %v99_v15 = vsub.f32 %v97_v9, %v98_v12  ;;  %v109_v16 = vsub.f32 %v107_v10, %v108_v13  ;;  %v151_v17 = vand.u32 4294901760, %v150_v14  ;;  %v767_v33 = vand.u32 4294901760, %v4642_v28  ;;  %s4553_s17 = scalar_lea.vmem %s3784_s16, 32  ;;  %p4558_p1 = scmp.lt.s32.totalorder %s3784_s16, %s3784_s16 }
   0xb   :  { %v761_v32 = vsub.f32 %v4631_v24, %v760_v27  ;;  %v774_v42 = vand.u32 4294901760, %v4653_v34  ;;  %v781_v52 = vand.u32 4294901760, %v4667_v45  ;;  %vm598_vm5 = vcmask 261120   ;;  %p4554_p0 = scmp.ne.s32.totalorder %s3784_s16, %s4553_s17  ;;  %p4559_p2 = scmp.lt.s32.totalorder %s4553_s17, %s4553_s17 }
   0xc   :  { %v100_v18 = vand.u32 4294901760, %v99_v15  ;;  %v110_v19 = vand.u32 4294901760, %v109_v16  ;;  %4030 = vmatprep.subr.mxu1 %v151_v17  ;;  %v768_v41 = vsub.f32 %v4642_v28, %v767_v33  ;;  %vm3174_vm6 = vcmask 254976  }
   0xd   :  { %4031 = vmatpush3.msra.mxu1 %v151_v17  ;;  %v762_v40 = vand.u32 4294901760, %v761_v32  ;;  %v775_v49 = vsub.f32 %v4653_v34, %v774_v42  ;;  %v782_v58 = vsub.f32 %v4667_v45, %v781_v52  ;;  %vm3767_vm7 = vcmask 31744   ;;  %p4560_p3 = por %p4559_p2, %p4558_p1 }
   0xe   :  { %4027 = vmatprep.mubr.f32.mxu0 %v100_v18  ;;  %4033 = vmatmul.mubr.f32.vlgmr.msra.gmra.mxu1 %v106_v7  ;;  %v769_v48 = vand.u32 4294901760, %v768_v41  ;;  %vm3770_vm8 = vcmask 97280   ;;  %vm3772_vm9 = vcmask 130048   ;;  %vm3774_vm10 = vcmask 162816  }
   0xf   :  { %4028 = vmatmul.mubr.f32.vlgmr.msra.gmra.mxu0 %v110_v19  ;;  %4040 = vmatprep.subr.mxu1 %v61_v3  ;;  %v776_v55 = vand.u32 4294901760, %v775_v49  ;;  %v783_v62 = vand.u32 4294901760, %v782_v58  ;;  %p4561_p4 = pnand %p4560_p3, %p4554_p0 }
  0x10   :  { %4036 = vmatpush3.msra.mxu0 %v148_v8  ;;  %4041 = vmatpush3.msra.mxu1 %v61_v3 }
  0x11   :  { %4037 = vmatprep.mubr.f32.mxu0 %v97_v9  ;;  %4042 = vmatprep.mubr.f32.mxu1 %v98_v12  ;;  %v519_v9 = vlaneseq  ;;  %v4706_v12 = vld [vmem:[%s5453_s3] sm:$0xff] }
  0x12   :  { %4045 = vmatprep.subr.mxu0 %v149_v11  ;;  %4043 = vmatmul.mubr.f32.vlgmr.msra.gmra.mxu1 %v108_v13 }
  0x13   :  { %4038 = vmatmul.mubr.f32.vlgmr.msra.gmra.mxu0 %v107_v10  ;;  %4050 = vmatprep.subr.mxu1 %v61_v3  ;;  %v4700_v10 = vshrl.u32 %v519_v9, 7 }
  0x14   :  { %4046 = vmatpush3.msra.mxu0 %v149_v11  ;;  %4051 = vmatpush3.msra.mxu1 %v61_v3 }
  0x15   :  { %4047 = vmatprep.mubr.f32.mxu0 %v96_v6  ;;  %4052 = vmatprep.mubr.f32.mxu1 %v96_v6  ;;  %v521_v11 = vsub.s32 0, %v4700_v10 }
  0x16   :  { %4053 = vmatmul.mubr.f32.vlgmr.msra.gmra.mxu1 %v106_v7  ;;  %4078 = vmatprep.subr.mxu1 %v4575_v20 }
  0x17   :  { %4048 = vmatmul.mubr.f32.vlgmr.msra.gmra.mxu0 %v106_v7  ;;  %4055 = vmatprep.subr.mxu0 %v4575_v20  ;;  %v522_v13 = vrot.slane %v4706_v12, %v521_v11 }
  0x18   :  { %4056 = vmatpush3.msra.mxu0 %v4625_v22  ;;  %4079 = vmatpush3.msra.mxu1 %v762_v40 }
  0x19   :  { %4057 = vmatprep.subr.mxu0 %v4575_v20  ;;  %4080 = vmatprep.subr.mxu1 %v4575_v20 }
  0x1a   :  { %4058 = vmatpush3.msra.mxu0 %v4633_v25  ;;  %4081 = vmatpush3.msra.mxu1 %v769_v48 }
  0x1b   :  { %4059 = vmatprep.subr.mxu0 %v4575_v20  ;;  %4082 = vmatprep.subr.mxu1 %v4575_v20 }
  0x1c   :  { %4060 = vmatpush3.msra.mxu0 %v4644_v29  ;;  %4083 = vmatpush3.msra.mxu1 %v776_v55 }
  0x1d   :  { %4061 = vmatprep.subr.mxu0 %v4575_v20  ;;  %4084 = vmatprep.subr.mxu1 %v4575_v20 }
  0x1e   :  { %4062 = vmatpush3.msra.mxu0 %v4659_v38  ;;  %4085 = vmatpush3.msra.mxu1 %v783_v62 }
  0x1f   :  { %4101 = vmatprep.subr.mxu0 %v4575_v20  ;;  %4086 = vmatprep.mubr.msk.f32.mxu1 %vm4576_vm1, %v4575_v20 }
  0x20   :  { %4063 = vmatprep.mubr.msk.f32.mxu0 %vm4576_vm1, %v4575_v20  ;;  %4124 = vmatprep.subr.mxu1 %v4575_v20 }
  0xce   :  { %v4034_v31 = vpop.f32.mrf.mxu1 }
  0xcf   :  { %v4029_v30 = vpop.f32.mrf.mxu0 }
  0xd0   :  { %v188_v37 = vpop.f32.mrf.mxu1  ;;  %v195_v39 = vadd.f32 %v4034_v31, %v4029_v30 }
  0xd1   :  { %v102_v36 = vpop.f32.mrf.mxu0 }
  0xd2   :  { %v4044_v44 = vpop.f32.mrf.mxu1  ;;  %v189_v46 = vadd.f32 %v188_v37, %v102_v36 }
  0xd3   :  { %v4039_v43 = vpop.f32.mrf.mxu0 }
  0xd4   :  { %v276_v47 = vadd.f32 %v4039_v43, %v195_v39  ;;  %v349_v51 = vpop.f32.mrf.mxu1 }
  0xd5   :  { %v268_v50 = vpop.f32.mrf.mxu0 }
  0xd6   :  { %v358_v53 = vadd.f32 %v4044_v44, %v276_v47  ;;  %v269_v54 = vadd.f32 %v268_v50, %v189_v46  ;;  %v4054_v57 = vpop.f32.mrf.mxu1 }
  0xd7   :  { %v4049_v56 = vpop.f32.mrf.mxu0 }
  0xd8   :  { %v350_v59 = vadd.f32 %v349_v51, %v269_v54  ;;  %v438_v60 = vadd.f32 %v4049_v56, %v358_v53  ;;  %v509_v1 = vpop.f32.mrf.mxu1 }
  0xd9   :  { %v431_v61 = vpop.f32.mrf.mxu0 }
  0xda   :  { %v4681_v63 = vadd.f32 %v4054_v57, %v438_v60  ;;  %v432_v0 = vadd.f32 %v431_v61, %v350_v59 }
  0xdc   :  { %v4685_v2 = vadd.f32 %v509_v1, %v432_v0  ;;  %v529_v3 = vrot.slane %v4681_v63, 2  ;;  %v524_v15 = vadd.f32 %v522_v13, %v4681_v63 }
  0xde   :  { %v528_v4 = vrot.slane %v4685_v2, 2  ;;  %v537_v8 = vsel %vm527_vm3, %v4685_v2, %v529_v3  ;;  %v523_v14 = vadd.f32 %v522_v13, %v4685_v2  ;;  %v541_v17 = vrot.slane %v524_v15, 6 }
  0xdf   :  { %v546_v23 = vrot.slane %v524_v15, 4  ;;  %v551_v51 = vrot.slane %v524_v15, 2 }
  0xe0   :  { %v530_v5 = vsel %vm527_vm3, %v528_v4, %v529_v3  ;;  %v540_v16 = vrot.slane %v523_v14, 6  ;;  %v545_v18 = vrot.slane %v523_v14, 4  ;;  %v550_v32 = vrot.slane %v523_v14, 2 }
  0xe1   :  { %561 = vrot.lane.b32.xlu0 %v530_v5, %s4577_s27  ;;  %v536_v6 = vsel %vm535_vm2, %v4685_v2, %v530_v5  ;;  %v534_v7 = vsel %vm533_vm4, %v4685_v2, %v530_v5 }
  0xe2   :  { %565 = vrot.lane.b32.xlu1 %v536_v6, %s4577_s27  ;;  %v542_v19 = vsel %vm533_vm4, %v540_v16, %v541_v17  ;;  %v547_v36 = vsel %vm535_vm2, %v545_v18, %v546_v23  ;;  %v555_v41 = vsel %vm533_vm4, %v524_v15, %v540_v16  ;;  %v552_v58 = vsel %vm527_vm3, %v550_v32, %v551_v51 }
  0xe3   :  { %v556_v31 = vsel %vm535_vm2, %v542_v19, %v545_v18  ;;  %v557_v47 = vsel %vm527_vm3, %v547_v36, %v550_v32 }
  0xe5   :  { %563 = vrot.lane.b32.xlu0 %v534_v7, %s4577_s27 }
  0xe6   :  { %567 = vrot.lane.b32.xlu1 %v537_v8, %s4577_s27 }
  0xe9   :  { %569 = vrot.lane.b32.xlu0 %v4685_v2, %s4577_s27 }
 0x153   :  { %v562_v21 = vpop.permute.xlu0 %561 }
 0x154   :  { %v576_v26 = vadd.f32 %v562_v21, %v523_v14  ;;  %v566_v30 = vpop.permute.xlu1 %565 }
 0x155   :  { %v578_v35 = vadd.f32 %v566_v30, %v556_v31 }
 0x156   :  { %v589_v37 = vmax.f32 %v576_v26, 0.0 }
 0x157   :  { %v591_v39 = vmax.f32 %v578_v35, 0.0  ;;  %v564_v40 = vpop.permute.xlu0 %563 }
 0x158   :  { %v600_v43 = vsel %vm598_vm5, %v589_v37, 0  ;;  %v577_v44 = vadd.f32 %v564_v40, %v555_v41  ;;  %v568_v46 = vpop.permute.xlu1 %567 }
 0x159   :  { %v4719_v48 = vand.u32 4294901760, %v600_v43  ;;  %v606_v49 = vsel %vm598_vm5, %v591_v39, 0  ;;  %v579_v50 = vadd.f32 %v568_v46, %v557_v47 }
 0x15a   :  { %v4722_v53 = vand.u32 4294901760, %v606_v49  ;;  %v590_v54 = vmax.f32 %v577_v44, 0.0 }
 0x15b   :  { %v4725_v55 = vsub.f32 %v600_v43, %v4719_v48  ;;  %v592_v56 = vmax.f32 %v579_v50, 0.0  ;;  %v570_v57 = vpop.permute.xlu0 %569  ;;  %4087 = vmatmul.mubr.f32.vlgmr.msra.gmra.mxu1 %v4719_v48 }
 0x15c   :  { %v4730_v59 = vsub.f32 %v606_v49, %v4722_v53  ;;  %v603_v60 = vsel %vm598_vm5, %v590_v54, 0  ;;  %v580_v61 = vadd.f32 %v570_v57, %v552_v58  ;;  %4089 = vmatprep.mubr.msk.f32.mxu1 %vm4576_vm1, %v4575_v20  ;;  %4125 = vmatpush3.msra.mxu1 %v4625_v22  ;;  %v596_v54 = vsub.s32 1, %v4700_v10 }
 0x15d   :  { %v685_v62 = vand.u32 4294901760, %v4725_v55  ;;  %v4737_v0 = vand.u32 4294901760, %v603_v60  ;;  %v609_v1 = vsel %vm598_vm5, %v592_v56, 0  ;;  %4126 = vmatprep.subr.mxu1 %v4575_v20 }
 0x15e   :  { %v4741_v3 = vand.u32 4294901760, %v609_v1  ;;  %v593_v4 = vmax.f32 %v580_v61, 0.0  ;;  %4127 = vmatpush3.msra.mxu1 %v4633_v25  ;;  %v705_v8 = vand.u32 4294901760, %v4730_v59 }
 0x15f   :  { %v4745_v5 = vsub.f32 %v603_v60, %v4737_v0  ;;  %4090 = vmatmul.mubr.f32.gmra.mxu1 %v4737_v0  ;;  %v686_v6 = vsub.f32 %v4725_v55, %v685_v62  ;;  %4128 = vmatprep.subr.mxu1 %v4575_v20 }
 0x160   :  { %v612_v7 = vsel %vm598_vm5, %v593_v4, 0  ;;  %4092 = vmatprep.mubr.msk.f32.mxu1 %vm4576_vm1, %v4575_v20  ;;  %4129 = vmatpush3.msra.mxu1 %v4644_v29  ;;  %v4756_v9 = vsub.f32 %v609_v1, %v4741_v3  ;;  %v706_v19 = vsub.f32 %v4730_v59, %v705_v8 }
 0x161   :  { %v4758_v13 = vand.u32 4294901760, %v612_v7  ;;  %v687_v14 = vand.u32 4294901760, %v686_v6  ;;  %v695_v15 = vand.u32 4294901760, %v4745_v5  ;;  %4130 = vmatprep.subr.mxu1 %v4575_v20 }
 0x162   :  { %4131 = vmatpush3.msra.mxu1 %v4659_v38  ;;  %v715_v21 = vand.u32 4294901760, %v4756_v9  ;;  %v707_v23 = vand.u32 4294901760, %v706_v19 }
 0x163   :  { %4064 = vmatmul.mubr.f32.vlgmr.msra.gmra.mxu0 %v687_v14  ;;  %4093 = vmatmul.mubr.f32.gmra.mxu1 %v4722_v53  ;;  %v696_v16 = vsub.f32 %v4745_v5, %v695_v15  ;;  %v4769_v17 = vsub.f32 %v612_v7, %v4758_v13 }
 0x164   :  { %4102 = vmatpush3.msra.mxu0 %v4631_v24  ;;  %4066 = vmatprep.mubr.msk.f32.mxu0 %vm4576_vm1, %v4575_v20  ;;  %v716_v26 = vsub.f32 %v4756_v9, %v715_v21 }
 0x165   :  { %4095 = vmatprep.mubr.msk.f32.mxu1 %vm4576_vm1, %v4575_v20  ;;  %v697_v18 = vand.u32 4294901760, %v696_v16  ;;  %4103 = vmatprep.subr.mxu0 %v4575_v20  ;;  %v725_v30 = vand.u32 4294901760, %v4769_v17 }
 0x166   :  { %4104 = vmatpush3.msra.mxu0 %v4642_v28  ;;  %4170 = vmatprep.subr.mxu1 %v4575_v20  ;;  %v717_v31 = vand.u32 4294901760, %v716_v26 }
 0x167   :  { %4067 = vmatmul.mubr.f32.gmra.mxu0 %v697_v18  ;;  %4096 = vmatmul.mubr.f32.gmra.mxu1 %v4741_v3  ;;  %v726_v32 = vsub.f32 %v4769_v17, %v725_v30 }
 0x168   :  { %4069 = vmatprep.mubr.msk.f32.mxu0 %vm4576_vm1, %v4575_v20  ;;  %4098 = vmatprep.mubr.msk.f32.mxu1 %vm4576_vm1, %v4575_v20 }
 0x169   :  { %4105 = vmatprep.subr.mxu0 %v4575_v20  ;;  %v727_v35 = vand.u32 4294901760, %v726_v32 }
 0x16a   :  { %4106 = vmatpush3.msra.mxu0 %v4653_v34 }
 0x16b   :  { %4070 = vmatmul.mubr.f32.gmra.mxu0 %v707_v23  ;;  %4099 = vmatmul.mubr.f32.gmra.mxu1 %v4758_v13 }
 0x16c   :  { %4072 = vmatprep.mubr.msk.f32.mxu0 %vm4576_vm1, %v4575_v20  ;;  %4132 = vmatprep.mubr.msk.f32.mxu1 %vm4576_vm1, %v4575_v20 }
 0x16d   :  { %4107 = vmatprep.subr.mxu0 %v4575_v20 }
 0x16e   :  { %4108 = vmatpush3.msra.mxu0 %v4667_v45 }
 0x16f   :  { %4073 = vmatmul.mubr.f32.gmra.mxu0 %v717_v31  ;;  %4133 = vmatmul.mubr.f32.vlgmr.msra.gmra.mxu1 %v685_v62 }
 0x170   :  { %4075 = vmatprep.mubr.msk.f32.mxu0 %vm4576_vm1, %v4575_v20  ;;  %4135 = vmatprep.mubr.msk.f32.mxu1 %vm4576_vm1, %v4575_v20 }
 0x171   :  { %4147 = vmatprep.subr.mxu0 %v4575_v20  ;;  %4171 = vmatpush3.msra.mxu1 %v4625_v22 }
 0x172   :  { %4172 = vmatprep.subr.mxu1 %v4575_v20 }
 0x173   :  { %4076 = vmatmul.mubr.f32.gmra.mxu0 %v727_v35  ;;  %4136 = vmatmul.mubr.f32.gmra.mxu1 %v695_v15 }
 0x174   :  { %4109 = vmatprep.mubr.msk.f32.mxu0 %vm4576_vm1, %v4575_v20  ;;  %4138 = vmatprep.mubr.msk.f32.mxu1 %vm4576_vm1, %v4575_v20 }
 0x175   :  { %4173 = vmatpush3.msra.mxu1 %v4633_v25 }
 0x176   :  { %4174 = vmatprep.subr.mxu1 %v4575_v20 }
 0x177   :  { %4110 = vmatmul.mubr.f32.vlgmr.msra.gmra.mxu0 %v4725_v55  ;;  %4139 = vmatmul.mubr.f32.gmra.mxu1 %v705_v8 }
 0x178   :  { %4148 = vmatpush3.msra.mxu0 %v760_v27  ;;  %4112 = vmatprep.mubr.msk.f32.mxu0 %vm4576_vm1, %v4575_v20 }
 0x179   :  { %4141 = vmatprep.mubr.msk.f32.mxu1 %vm4576_vm1, %v4575_v20  ;;  %4149 = vmatprep.subr.mxu0 %v4575_v20 }
 0x17a   :  { %4150 = vmatpush3.msra.mxu0 %v767_v33  ;;  %4175 = vmatpush3.msra.mxu1 %v4644_v29 }
 0x17b   :  { %4113 = vmatmul.mubr.f32.gmra.mxu0 %v4745_v5  ;;  %4142 = vmatmul.mubr.f32.gmra.mxu1 %v715_v21 }
 0x17c   :  { %4115 = vmatprep.mubr.msk.f32.mxu0 %vm4576_vm1, %v4575_v20  ;;  %4144 = vmatprep.mubr.msk.f32.mxu1 %vm4576_vm1, %v4575_v20 }
 0x17d   :  { %4151 = vmatprep.subr.mxu0 %v4575_v20  ;;  %4176 = vmatprep.subr.mxu1 %v4575_v20 }
 0x17e   :  { %4152 = vmatpush3.msra.mxu0 %v774_v42  ;;  %4177 = vmatpush3.msra.mxu1 %v4659_v38 }
 0x17f   :  { %4116 = vmatmul.mubr.f32.gmra.mxu0 %v4730_v59  ;;  %4145 = vmatmul.mubr.f32.gmra.mxu1 %v725_v30  ;;  %v597_v59 = vrot.slane %v4706_v12, %v596_v54 }
 0x180   :  { %4118 = vmatprep.mubr.msk.f32.mxu0 %vm4576_vm1, %v4575_v20  ;;  %4178 = vmatprep.mubr.msk.f32.mxu1 %vm4576_vm1, %v4575_v20 }
 0x181   :  { %4153 = vmatprep.subr.mxu0 %v4575_v20  ;;  %4216 = vmatprep.subr.mxu1 %v4575_v20 }
 0x182   :  { %4154 = vmatpush3.msra.mxu0 %v781_v52 }
 0x183   :  { %4119 = vmatmul.mubr.f32.gmra.mxu0 %v4756_v9  ;;  %4179 = vmatmul.mubr.f32.vlgmr.msra.gmra.mxu1 %v4719_v48 }
 0x184   :  { %4121 = vmatprep.mubr.msk.f32.mxu0 %vm4576_vm1, %v4575_v20  ;;  %4181 = vmatprep.mubr.msk.f32.mxu1 %vm4576_vm1, %v4575_v20 }
 0x185   :  { %4193 = vmatprep.subr.mxu0 %v4575_v20 }
 0x187   :  { %4122 = vmatmul.mubr.f32.gmra.mxu0 %v4769_v17  ;;  %4182 = vmatmul.mubr.f32.gmra.mxu1 %v4737_v0 }
 0x188   :  { %4155 = vmatprep.mubr.msk.f32.mxu0 %vm4576_vm1, %v4575_v20  ;;  %4184 = vmatprep.mubr.msk.f32.mxu1 %vm4576_vm1, %v4575_v20 }
 0x18b   :  { %4156 = vmatmul.mubr.f32.vlgmr.msra.gmra.mxu0 %v4719_v48  ;;  %4185 = vmatmul.mubr.f32.gmra.mxu1 %v4722_v53 }
 0x18c   :  { %4158 = vmatprep.mubr.msk.f32.mxu0 %vm4576_vm1, %v4575_v20  ;;  %4187 = vmatprep.mubr.msk.f32.mxu1 %vm4576_vm1, %v4575_v20 }
 0x18f   :  { %4159 = vmatmul.mubr.f32.gmra.mxu0 %v4737_v0  ;;  %4188 = vmatmul.mubr.f32.gmra.mxu1 %v4741_v3 }
 0x190   :  { %4161 = vmatprep.mubr.msk.f32.mxu0 %vm4576_vm1, %v4575_v20  ;;  %4190 = vmatprep.mubr.msk.f32.mxu1 %vm4576_vm1, %v4575_v20 }
 0x193   :  { %4162 = vmatmul.mubr.f32.gmra.mxu0 %v4722_v53  ;;  %4191 = vmatmul.mubr.f32.gmra.mxu1 %v4758_v13 }
 0x194   :  { %4164 = vmatprep.mubr.msk.f32.mxu0 %vm4576_vm1, %v4575_v20  ;;  %4224 = vmatprep.mubr.msk.f32.mxu1 %vm4576_vm1, %v4575_v20 }
 0x197   :  { %4165 = vmatmul.mubr.f32.gmra.mxu0 %v4741_v3 }
 0x198   :  { %4167 = vmatprep.mubr.msk.f32.mxu0 %vm4576_vm1, %v4575_v20 }
 0x19b   :  { %4168 = vmatmul.mubr.f32.gmra.mxu0 %v4758_v13 }
 0x19c   :  { %4201 = vmatprep.mubr.msk.f32.mxu0 %vm4576_vm1, %v4575_v20 }
 0x21b   :  { %v820_v22 = vpop.f32.mrf.mxu1 }
 0x21d   :  { %v4088_v24 = vpop.f32.mrf.mxu1 }
 0x21f   :  { %v826_v25 = vpop.f32.mrf.mxu1 }
 0x221   :  { %v4091_v27 = vpop.f32.mrf.mxu1 }
 0x223   :  { %v689_v28 = vpop.f32.mrf.mxu0  ;;  %v832_v29 = vpop.f32.mrf.mxu1 }
 0x224   :  { %v690_v1 = vadd.f32 %v689_v28, %v597_v59 }
 0x225   :  { %v4065_v33 = vpop.f32.mrf.mxu0  ;;  %v4094_v34 = vpop.f32.mrf.mxu1 }
 0x226   :  { %v821_v8 = vadd.f32 %v820_v22, %v690_v1 }
 0x227   :  { %v699_v38 = vpop.f32.mrf.mxu0  ;;  %v838_v42 = vpop.f32.mrf.mxu1 }
 0x228   :  { %v700_v7 = vadd.f32 %v699_v38, %v597_v59 }
 0x229   :  { %v4068_v45 = vpop.f32.mrf.mxu0  ;;  %v4097_v52 = vpop.f32.mrf.mxu1 }
 0x22a   :  { %v827_v18 = vadd.f32 %v826_v25, %v700_v7 }
 0x22b   :  { %v709_v36 = vpop.f32.mrf.mxu0  ;;  %v4875_v37 = vpop.f32.mrf.mxu1 }
 0x22c   :  { %v710_v17 = vadd.f32 %v709_v36, %v597_v59 }
 0x22d   :  { %v4071_v39 = vpop.f32.mrf.mxu0  ;;  %v4100_v40 = vpop.f32.mrf.mxu1 }
 0x22e   :  { %v833_v35 = vadd.f32 %v832_v29, %v710_v17 }
 0x22f   :  { %v719_v41 = vpop.f32.mrf.mxu0  ;;  %v1029_v43 = vpop.f32.mrf.mxu1 }
 0x230   :  { %v720_v32 = vadd.f32 %v719_v41, %v597_v59 }
 0x231   :  { %v4074_v44 = vpop.f32.mrf.mxu0  ;;  %v4134_v46 = vpop.f32.mrf.mxu1 }
 0x232   :  { %v839_v39 = vadd.f32 %v838_v42, %v720_v32 }
 0x233   :  { %v729_v47 = vpop.f32.mrf.mxu0  ;;  %v1037_v48 = vpop.f32.mrf.mxu1 }
 0x234   :  { %v730_v52 = vadd.f32 %v729_v47, %v597_v59 }
 0x235   :  { %v4077_v49 = vpop.f32.mrf.mxu0  ;;  %v4137_v50 = vpop.f32.mrf.mxu1 }
 0x236   :  { %v845_v50 = vadd.f32 %v4875_v37, %v730_v52 }
 0x237   :  { %v924_v51 = vpop.f32.mrf.mxu0  ;;  %v1045_v53 = vpop.f32.mrf.mxu1 }
 0x238   :  { %v925_v14 = vadd.f32 %v924_v51, %v821_v8 }
 0x239   :  { %v4111_v55 = vpop.f32.mrf.mxu0  ;;  %v4140_v56 = vpop.f32.mrf.mxu1 }
 0x23a   :  { %v1030_v26 = vadd.f32 %v1029_v43, %v925_v14 }
 0x23b   :  { %v931_v57 = vpop.f32.mrf.mxu0  ;;  %v1053_v58 = vpop.f32.mrf.mxu1 }
 0x23c   :  { %v932_v23 = vadd.f32 %v931_v57, %v827_v18 }
 0x23d   :  { %v4114_v60 = vpop.f32.mrf.mxu0  ;;  %v4143_v61 = vpop.f32.mrf.mxu1 }
 0x23e   :  { %v1038_v22 = vadd.f32 %v1037_v48, %v932_v23 }
 0x23f   :  { %v938_v62 = vpop.f32.mrf.mxu0  ;;  %v1061_v0 = vpop.f32.mrf.mxu1 }
 0x240   :  { %v939_v33 = vadd.f32 %v938_v62, %v833_v35 }
 0x241   :  { %v4117_v3 = vpop.f32.mrf.mxu0  ;;  %v4146_v4 = vpop.f32.mrf.mxu1 }
 0x242   :  { %v1046_v46 = vadd.f32 %v1045_v53, %v939_v33 }
 0x243   :  { %v945_v5 = vpop.f32.mrf.mxu0  ;;  %v1243_v6 = vpop.f32.mrf.mxu1 }
 0x244   :  { %v946_v44 = vadd.f32 %v945_v5, %v839_v39  ;;  %v587_v39 = vld [vmem:[%s5452_s2 + $0x30] sm:$0xff] }
 0x245   :  { %v4120_v9 = vpop.f32.mrf.mxu0  ;;  %v4180_v13 = vpop.f32.mrf.mxu1 }
 0x246   :  { %v1054_v56 = vadd.f32 %v1053_v58, %v946_v44 }
 0x247   :  { %v952_v15 = vpop.f32.mrf.mxu0  ;;  %v1249_v16 = vpop.f32.mrf.mxu1 }
 0x248   :  { %v953_v42 = vadd.f32 %v952_v15, %v845_v50 }
 0x249   :  { %v4123_v19 = vpop.f32.mrf.mxu0  ;;  %v4183_v21 = vpop.f32.mrf.mxu1 }
 0x24a   :  { %v1062_v62 = vadd.f32 %v1061_v0, %v953_v42 }
 0x24b   :  { %v1144_v30 = vpop.f32.mrf.mxu0  ;;  %v1255_v31 = vpop.f32.mrf.mxu1 }
 0x24c   :  { %v1145_v24 = vadd.f32 %v1144_v30, %v1030_v26 }
 0x24d   :  { %v4157_v27 = vpop.f32.mrf.mxu0  ;;  %v4186_v28 = vpop.f32.mrf.mxu1 }
 0x24e   :  { %v1244_v34 = vadd.f32 %v1243_v6, %v1145_v24 }
 0x24f   :  { %v1150_v38 = vpop.f32.mrf.mxu0  ;;  %v1261_v45 = vpop.f32.mrf.mxu1 }
 0x250   :  { %v1151_v36 = vadd.f32 %v1150_v38, %v1038_v22  ;;  %v1271_v25 = vsel %vm598_vm5, %v1244_v34, 0.0 }
 0x251   :  { %v4189_v40 = vpop.f32.mrf.mxu1  ;;  %1272 = vadd.xlane.f32.xlu1 %v1271_v25  ;;  %v4160_v43 = vpop.f32.mrf.mxu0  ;;  %v4924_v25 = vand.u32 4294901760, %v587_v39 }
 0x252   :  { %v1250_v41 = vadd.f32 %v1249_v16, %v1151_v36  ;;  %v586_v40 = vld [vmem:[%s5452_s2 + $0x28] sm:$0xff] }
 0x253   :  { %v1156_v29 = vpop.f32.mrf.mxu0  ;;  %v1267_v49 = vpop.f32.mrf.mxu1  ;;  %v4933_v44 = vsub.f32 %v587_v39, %v4924_v25 }
 0x254   :  { %v1157_v51 = vadd.f32 %v1156_v29, %v1046_v46  ;;  %v1274_v48 = vsel %vm598_vm5, %v1250_v41, 0.0  ;;  %v4935_v46 = vand.u32 4294901760, %v586_v40 }
 0x255   :  { %v4192_v55 = vpop.f32.mrf.mxu1  ;;  %1275 = vadd.xlane.f32.xlu0 %v1274_v48  ;;  %v4163_v47 = vpop.f32.mrf.mxu0 }
 0x256   :  { %v1256_v57 = vadd.f32 %v1255_v31, %v1157_v51  ;;  %v4946_v50 = vsub.f32 %v586_v40, %v4935_v46 }
 0x257   :  { %v1162_v59 = vpop.f32.mrf.mxu0 }
 0x258   :  { %v1163_v60 = vadd.f32 %v1162_v59, %v1054_v56  ;;  %v1277_v61 = vsel %vm598_vm5, %v1256_v57, 0.0  ;;  %v1539_v47 = vand.u32 4294901760, %v4946_v50 }
 0x259   :  { %1278 = vadd.xlane.f32.xlu0 %v1277_v61  ;;  %v4166_v53 = vpop.f32.mrf.mxu0 }
 0x25a   :  { %v1262_v1 = vadd.f32 %v1261_v45, %v1163_v60  ;;  %v588_v45 = vld [vmem:[%s5452_s2 + $0x38] sm:$0xff] }
 0x25b   :  { %v1168_v3 = vpop.f32.mrf.mxu0  ;;  %v4915_v52 = vand.u32 4294901760, %v588_v45 }
 0x25c   :  { %v1169_v4 = vadd.f32 %v1168_v3, %v1062_v62  ;;  %v1280_v37 = vsel %vm598_vm5, %v1262_v1, 0.0 }
 0x25d   :  { %1281 = vadd.xlane.f32.xlu1 %v1280_v37  ;;  %v4169_v5 = vpop.f32.mrf.mxu0  ;;  %4194 = vmatpush3.msra.mxu0 %v4915_v52  ;;  %v4922_v36 = vsub.f32 %v588_v45, %v4915_v52 }
 0x25e   :  { %v1268_v6 = vadd.f32 %v1267_v49, %v1169_v4  ;;  %4195 = vmatprep.subr.mxu0 %v4575_v20  ;;  %v1532_v49 = vand.u32 4294901760, %v4933_v44 }
 0x25f   :  { %v1525_v43 = vand.u32 4294901760, %v4922_v36  ;;  %4196 = vmatpush3.msra.mxu0 %v4924_v25 }
 0x260   :  { %v1283_v7 = vsel %vm598_vm5, %v1268_v6, 0.0  ;;  %4197 = vmatprep.subr.mxu0 %v4575_v20  ;;  %v1533_v55 = vsub.f32 %v4933_v44, %v1532_v49 }
 0x261   :  { %1284 = vadd.xlane.f32.xlu0 %v1283_v7  ;;  %v1526_v29 = vsub.f32 %v4922_v36, %v1525_v43  ;;  %4198 = vmatpush3.msra.mxu0 %v4935_v46 }
 0x262   :  { %4199 = vmatprep.subr.mxu0 %v4575_v20  ;;  %v1534_v56 = vand.u32 4294901760, %v1533_v55 }
 0x263   :  { %v1527_v48 = vand.u32 4294901760, %v1526_v29 }
 0x265   :  { %4217 = vmatpush3.msra.mxu1 %v1527_v48 }
 0x266   :  { %4218 = vmatprep.subr.mxu1 %v4575_v20 }
 0x267   :  { %4219 = vmatpush3.msra.mxu1 %v1534_v56 }
 0x268   :  { %4220 = vmatprep.subr.mxu1 %v4575_v20 }
 0x2da   :  { %v1273_v58 = vpop.xlane.xlu1 %1272 }
 0x2db   :  { %v1287_v8 = vmul.f32 0.03125, %v1273_v58 }
 0x2dd   :  { %v4887_v9 = vsub.f32 %v1244_v34, %v1287_v8 }
 0x2de   :  { %v1276_v13 = vpop.xlane.xlu0 %1275 }
 0x2df   :  { %v1288_v14 = vmul.f32 0.03125, %v1276_v13  ;;  %v1297_v0 = vmul.f32 %v4887_v9, %v4887_v9 }
 0x2e1   :  { %v4891_v15 = vsub.f32 %v1250_v41, %v1288_v14  ;;  %v1302_v16 = vsel %vm598_vm5, %v1297_v0, 0.0  ;;  %v585_v41 = vld [vmem:[%s5452_s2 + $0x20] sm:$0xff]  ;;  %v1339_v14 = vsub.s32 2, %v4700_v10 }
 0x2e2   :  { %v1279_v17 = vpop.xlane.xlu0 %1278  ;;  %1303 = vadd.xlane.f32.xlu1 %v1302_v16  ;;  %v4949_v51 = vand.u32 4294901760, %v585_v41  ;;  %v1348_v16 = vsub.s32 3, %v4700_v10 }
 0x2e3   :  { %v1289_v18 = vmul.f32 0.03125, %v1279_v17  ;;  %v1298_v19 = vmul.f32 %v4891_v15, %v4891_v15 }
 0x2e4   :  { %v4957_v42 = vsub.f32 %v585_v41, %v4949_v51  ;;  %4200 = vmatpush3.msra.mxu0 %v4949_v51 }
 0x2e5   :  { %v4896_v21 = vsub.f32 %v1256_v57, %v1289_v18  ;;  %v1305_v23 = vsel %vm598_vm5, %v1298_v19, 0.0  ;;  %4239 = vmatprep.subr.mxu0 %v4575_v20  ;;  %v1540_v57 = vsub.f32 %v4946_v50, %v1539_v47  ;;  %v1340_v19 = vrot.slane %v4706_v12, %v1339_v14 }
 0x2e6   :  { %v1282_v26 = vpop.xlane.xlu1 %1281  ;;  %1306 = vadd.xlane.f32.xlu0 %v1305_v23  ;;  %v1546_v59 = vand.u32 4294901760, %v4957_v42 }
 0x2e7   :  { %v1290_v30 = vmul.f32 0.03125, %v1282_v26  ;;  %v1299_v31 = vmul.f32 %v4896_v21, %v4896_v21  ;;  %v1541_v60 = vand.u32 4294901760, %v1540_v57 }
 0x2e8   :  { %v1547_v61 = vsub.f32 %v4957_v42, %v1546_v59 }
 0x2e9   :  { %v4901_v32 = vsub.f32 %v1262_v1, %v1290_v30  ;;  %v1308_v35 = vsel %vm598_vm5, %v1299_v31, 0.0  ;;  %4221 = vmatpush3.msra.mxu1 %v1541_v60  ;;  %v1349_v31 = vrot.slane %v4706_v12, %v1348_v16 }
 0x2ea   :  { %1309 = vadd.xlane.f32.xlu1 %v1308_v35  ;;  %v1285_v24 = vpop.xlane.xlu0 %1284  ;;  %v1548_v53 = vand.u32 4294901760, %v1547_v61  ;;  %4222 = vmatprep.subr.mxu1 %v4575_v20 }
 0x2eb   :  { %v1291_v27 = vmul.f32 0.03125, %v1285_v24  ;;  %v1300_v28 = vmul.f32 %v4901_v32, %v4901_v32 }
 0x2ec   :  { %4223 = vmatpush3.msra.mxu1 %v1548_v53 }
 0x2ed   :  { %v4906_v33 = vsub.f32 %v1268_v6, %v1291_v27  ;;  %v1311_v22 = vsel %vm598_vm5, %v1300_v28, 0.0  ;;  %4262 = vmatprep.subr.mxu1 %v4575_v20 }
 0x2ee   :  { %1312 = vadd.xlane.f32.xlu0 %v1311_v22 }
 0x2ef   :  { %v1301_v34 = vmul.f32 %v4906_v33, %v4906_v33 }
 0x2f1   :  { %v1314_v38 = vsel %vm598_vm5, %v1301_v34, 0.0 }
 0x2f2   :  { %1315 = vadd.xlane.f32.xlu1 %v1314_v38 }
 0x36b   :  { %v1304_v62 = vpop.xlane.xlu1 %1303 }
 0x36c   :  { %v1317_v1 = vmul.f32 0.03125, %v1304_v62 }
 0x36e   :  { %v1322_v3 = vadd.f32 1e-05, %v1317_v1 }
 0x36f   :  { %v1307_v4 = vpop.xlane.xlu0 %1306 }
 0x370   :  { %4538 = vrsqrt.f32 %v1322_v3  ;;  %v1318_v37 = vmul.f32 0.03125, %v1307_v4 }
 0x372   :  { %v1323_v5 = vadd.f32 1e-05, %v1318_v37 }
 0x373   :  { %v1310_v6 = vpop.xlane.xlu1 %1309 }
 0x374   :  { %4540 = vrsqrt.f32 %v1323_v5  ;;  %v1319_v7 = vmul.f32 0.03125, %v1310_v6 }
 0x376   :  { %v1324_v58 = vadd.f32 1e-05, %v1319_v7 }
 0x377   :  { %v1313_v8 = vpop.xlane.xlu0 %1312 }
 0x378   :  { %4542 = vrsqrt.f32 %v1324_v58  ;;  %v1320_v13 = vmul.f32 0.03125, %v1313_v8 }
 0x37a   :  { %v1325_v0 = vadd.f32 1e-05, %v1320_v13 }
 0x37b   :  { %v1316_v17 = vpop.xlane.xlu1 %1315 }
 0x37c   :  { %4544 = vrsqrt.f32 %v1325_v0  ;;  %v1321_v18 = vmul.f32 0.03125, %v1316_v17 }
 0x37d   :  { %v4539_v23 = vpop.eup %4538 }
 0x37e   :  { %v1332_v26 = vmul.f32 %v4539_v23, %v4887_v9  ;;  %v1326_v30 = vadd.f32 1e-05, %v1321_v18 }
 0x380   :  { %4546 = vrsqrt.f32 %v1326_v30  ;;  %v1341_v35 = vmul.f32 %v1340_v19, %v1332_v26 }
 0x381   :  { %v4541_v24 = vpop.eup %4540 }
 0x382   :  { %v1350_v27 = vadd.f32 %v1349_v31, %v1341_v35  ;;  %v1333_v28 = vmul.f32 %v4541_v24, %v4891_v15 }
 0x384   :  { %v1355_v22 = vmax.f32 %v1350_v27, 0.0  ;;  %v1342_v34 = vmul.f32 %v1340_v19, %v1333_v28 }
 0x385   :  { %v4543_v38 = vpop.eup %4542 }
 0x386   :  { %v1365_v45 = vsel %vm598_vm5, %v1355_v22, 0  ;;  %v1351_v39 = vadd.f32 %v1349_v31, %v1342_v34  ;;  %v1334_v40 = vmul.f32 %v4543_v38, %v4896_v21 }
 0x387   :  { %v4980_v41 = vand.u32 4294901760, %v1365_v45 }
 0x388   :  { %v1356_v9 = vmax.f32 %v1351_v39, 0.0  ;;  %v1343_v29 = vmul.f32 %v1340_v19, %v1334_v40 }
 0x389   :  { %v4545_v48 = vpop.eup %4544  ;;  %v4983_v12 = vsub.f32 %v1365_v45, %v4980_v41  ;;  %4225 = vmatmul.mubr.f32.vlgmr.msra.gmra.mxu1 %v4980_v41 }
 0x38a   :  { %4227 = vmatprep.mubr.msk.f32.mxu1 %vm4576_vm1, %v4575_v20  ;;  %v1368_v15 = vsel %vm598_vm5, %v1356_v9, 0  ;;  %v1352_v55 = vadd.f32 %v1349_v31, %v1343_v29  ;;  %4263 = vmatpush3.msra.mxu1 %v4915_v52  ;;  %v1335_v21 = vmul.f32 %v4545_v48, %v4901_v32 }
 0x38b   :  { %v4991_v56 = vand.u32 4294901760, %v1368_v15  ;;  %v1450_v57 = vand.u32 4294901760, %v4983_v12  ;;  %4264 = vmatprep.subr.mxu1 %v4575_v20 }
 0x38c   :  { %v1357_v60 = vmax.f32 %v1352_v55, 0.0  ;;  %v1344_v61 = vmul.f32 %v1340_v19, %v1335_v21  ;;  %4265 = vmatpush3.msra.mxu1 %v4924_v25 }
 0x38d   :  { %v4547_v53 = vpop.eup %4546  ;;  %4228 = vmatmul.mubr.f32.gmra.mxu1 %v4991_v56  ;;  %v1451_v62 = vsub.f32 %v4983_v12, %v1450_v57  ;;  %v4999_v1 = vsub.f32 %v1368_v15, %v4991_v56  ;;  %4266 = vmatprep.subr.mxu1 %v4575_v20 }
 0x38e   :  { %4230 = vmatprep.mubr.msk.f32.mxu1 %vm4576_vm1, %v4575_v20  ;;  %v1371_v32 = vsel %vm598_vm5, %v1357_v60, 0  ;;  %v1353_v3 = vadd.f32 %v1349_v31, %v1344_v61  ;;  %v1336_v4 = vmul.f32 %v4547_v53, %v4906_v33  ;;  %4267 = vmatpush3.msra.mxu1 %v4935_v46 }
 0x38f   :  { %v1452_v37 = vand.u32 4294901760, %v1451_v62  ;;  %v5007_v5 = vand.u32 4294901760, %v1371_v32  ;;  %v1460_v6 = vand.u32 4294901760, %v4999_v1  ;;  %4268 = vmatprep.subr.mxu1 %v4575_v20 }
 0x390   :  { %v1358_v7 = vmax.f32 %v1353_v3, 0.0  ;;  %v1345_v58 = vmul.f32 %v1340_v19, %v1336_v4  ;;  %4269 = vmatpush3.msra.mxu1 %v4949_v51 }
 0x391   :  { %4202 = vmatmul.mubr.f32.vlgmr.msra.gmra.mxu0 %v1452_v37  ;;  %4231 = vmatmul.mubr.f32.gmra.mxu1 %v5007_v5  ;;  %v1461_v8 = vsub.f32 %v4999_v1, %v1460_v6  ;;  %v5015_v33 = vsub.f32 %v1371_v32, %v5007_v5 }
 0x392   :  { %4240 = vmatpush3.msra.mxu0 %v4922_v36  ;;  %4204 = vmatprep.mubr.msk.f32.mxu0 %vm4576_vm1, %v4575_v20  ;;  %v1374_v13 = vsel %vm598_vm5, %v1358_v7, 0  ;;  %v1354_v14 = vadd.f32 %v1349_v31, %v1345_v58 }
 0x393   :  { %4233 = vmatprep.mubr.msk.f32.mxu1 %vm4576_vm1, %v4575_v20  ;;  %v1462_v0 = vand.u32 4294901760, %v1461_v8  ;;  %v5023_v16 = vand.u32 4294901760, %v1374_v13  ;;  %4241 = vmatprep.subr.mxu0 %v4575_v20  ;;  %v1470_v17 = vand.u32 4294901760, %v5015_v33 }
 0x394   :  { %4242 = vmatpush3.msra.mxu0 %v4933_v44  ;;  %v1359_v18 = vmax.f32 %v1354_v14, 0.0  ;;  %4308 = vmatprep.subr.mxu1 %v4575_v20 }
 0x395   :  { %4205 = vmatmul.mubr.f32.gmra.mxu0 %v1462_v0  ;;  %4234 = vmatmul.mubr.f32.gmra.mxu1 %v5023_v16  ;;  %v1471_v19 = vsub.f32 %v5015_v33, %v1470_v17  ;;  %v1479_v23 = vsub.f32 %v1374_v13, %v5023_v16 }
 0x396   :  { %4207 = vmatprep.mubr.msk.f32.mxu0 %vm4576_vm1, %v4575_v20  ;;  %4236 = vmatprep.mubr.msk.f32.mxu1 %vm4576_vm1, %v4575_v20  ;;  %v1377_v26 = vsel %vm598_vm5, %v1359_v18, 0 }
 0x397   :  { %v1472_v30 = vand.u32 4294901760, %v1471_v19  ;;  %v5037_v31 = vand.u32 4294901760, %v1377_v26  ;;  %4243 = vmatprep.subr.mxu0 %v4575_v20  ;;  %v1480_v35 = vand.u32 4294901760, %v1479_v23 }
 0x398   :  { %4244 = vmatpush3.msra.mxu0 %v4946_v50 }
 0x399   :  { %4208 = vmatmul.mubr.f32.gmra.mxu0 %v1472_v30  ;;  %4237 = vmatmul.mubr.f32.gmra.mxu1 %v5037_v31  ;;  %v1481_v24 = vsub.f32 %v1479_v23, %v1480_v35  ;;  %v1489_v27 = vsub.f32 %v1377_v26, %v5037_v31 }
 0x39a   :  { %4210 = vmatprep.mubr.msk.f32.mxu0 %vm4576_vm1, %v4575_v20  ;;  %4270 = vmatprep.mubr.msk.f32.mxu1 %vm4576_vm1, %v4575_v20 }
 0x39b   :  { %v1482_v28 = vand.u32 4294901760, %v1481_v24  ;;  %4245 = vmatprep.subr.mxu0 %v4575_v20  ;;  %v1490_v22 = vand.u32 4294901760, %v1489_v27 }
 0x39c   :  { %4246 = vmatpush3.msra.mxu0 %v4957_v42 }
 0x39d   :  { %4211 = vmatmul.mubr.f32.gmra.mxu0 %v1482_v28  ;;  %4271 = vmatmul.mubr.f32.vlgmr.msra.gmra.mxu1 %v1450_v57  ;;  %v1491_v34 = vsub.f32 %v1489_v27, %v1490_v22 }
 0x39e   :  { %4213 = vmatprep.mubr.msk.f32.mxu0 %vm4576_vm1, %v4575_v20  ;;  %4273 = vmatprep.mubr.msk.f32.mxu1 %vm4576_vm1, %v4575_v20 }
 0x39f   :  { %v1492_v38 = vand.u32 4294901760, %v1491_v34  ;;  %4285 = vmatprep.subr.mxu0 %v4575_v20  ;;  %4309 = vmatpush3.msra.mxu1 %v4915_v52  ;;  %v2064_v52 = vld [vmem:[%s5452_s2 + $0x58] sm:$0xff] }
 0x3a0   :  { %4310 = vmatprep.subr.mxu1 %v4575_v20  ;;  %v5124_v36 = vand.u32 4294901760, %v2064_v52 }
 0x3a1   :  { %4214 = vmatmul.mubr.f32.gmra.mxu0 %v1492_v38  ;;  %4274 = vmatmul.mubr.f32.gmra.mxu1 %v1460_v6  ;;  %v1362_v38 = vsub.s32 4, %v4700_v10 }
 0x3a2   :  { %4247 = vmatprep.mubr.msk.f32.mxu0 %vm4576_vm1, %v4575_v20  ;;  %4276 = vmatprep.mubr.msk.f32.mxu1 %vm4576_vm1, %v4575_v20 }
 0x3a3   :  { %4311 = vmatpush3.msra.mxu1 %v4924_v25  ;;  %v2063_v25 = vld [vmem:[%s5452_s2 + $0x50] sm:$0xff] }
 0x3a4   :  { %4312 = vmatprep.subr.mxu1 %v4575_v20  ;;  %v5133_v44 = vand.u32 4294901760, %v2063_v25 }
 0x3a5   :  { %4248 = vmatmul.mubr.f32.vlgmr.msra.gmra.mxu0 %v4983_v12  ;;  %4277 = vmatmul.mubr.f32.gmra.mxu1 %v1470_v17 }
 0x3a6   :  { %4286 = vmatpush3.msra.mxu0 %v1525_v43  ;;  %4250 = vmatprep.mubr.msk.f32.mxu0 %vm4576_vm1, %v4575_v20  ;;  %v5131_v43 = vsub.f32 %v2064_v52, %v5124_v36 }
 0x3a7   :  { %4279 = vmatprep.mubr.msk.f32.mxu1 %vm4576_vm1, %v4575_v20  ;;  %4287 = vmatprep.subr.mxu0 %v4575_v20 }
 0x3a8   :  { %4288 = vmatpush3.msra.mxu0 %v1532_v49  ;;  %4313 = vmatpush3.msra.mxu1 %v4935_v46  ;;  %v5140_v46 = vand.u32 4294901760, %v5131_v43  ;;  %v5144_v49 = vsub.f32 %v2063_v25, %v5133_v44 }
 0x3a9   :  { %4251 = vmatmul.mubr.f32.gmra.mxu0 %v4999_v1  ;;  %4280 = vmatmul.mubr.f32.gmra.mxu1 %v1480_v35 }
 0x3aa   :  { %4253 = vmatprep.mubr.msk.f32.mxu0 %vm4576_vm1, %v4575_v20  ;;  %4282 = vmatprep.mubr.msk.f32.mxu1 %vm4576_vm1, %v4575_v20  ;;  %v5155_v42 = vand.u32 4294901760, %v5144_v49 }
 0x3ab   :  { %4289 = vmatprep.subr.mxu0 %v4575_v20  ;;  %4314 = vmatprep.subr.mxu1 %v4575_v20 }
 0x3ac   :  { %4290 = vmatpush3.msra.mxu0 %v1539_v47  ;;  %4315 = vmatpush3.msra.mxu1 %v4949_v51  ;;  %v2061_v51 = vld [vmem:[%s5452_s2 + $0x40] sm:$0xff]  ;;  %v2188_v47 = vsub.f32 %v5131_v43, %v5140_v46  ;;  %v2195_v40 = vsub.f32 %v5144_v49, %v5155_v42 }
 0x3ad   :  { %4254 = vmatmul.mubr.f32.gmra.mxu0 %v5015_v33  ;;  %4283 = vmatmul.mubr.f32.gmra.mxu1 %v1490_v22  ;;  %v5161_v45 = vand.u32 4294901760, %v2061_v51 }
 0x3ae   :  { %4256 = vmatprep.mubr.msk.f32.mxu0 %vm4576_vm1, %v4575_v20  ;;  %4316 = vmatprep.mubr.msk.f32.mxu1 %vm4576_vm1, %v4575_v20  ;;  %v2189_v39 = vand.u32 4294901760, %v2188_v47  ;;  %v2196_v29 = vand.u32 4294901760, %v2195_v40  ;;  %v5191_v47 = vld [vmem:[%s5453_s3] sm:$0xff] }
 0x3af   :  { %4291 = vmatprep.subr.mxu0 %v4575_v20  ;;  %v5170_v9 = vsub.f32 %v2061_v51, %v5161_v45 }
 0x3b0   :  { %4292 = vmatpush3.msra.mxu0 %v1546_v59  ;;  %4342 = vmatprep.subr.mxu1 %v2189_v39 }
 0x3b1   :  { %4257 = vmatmul.mubr.f32.gmra.mxu0 %v1479_v23  ;;  %4317 = vmatmul.mubr.f32.vlgmr.msra.gmra.mxu1 %v4980_v41  ;;  %v5177_v12 = vand.u32 4294901760, %v5170_v9 }
 0x3b2   :  { %4259 = vmatprep.mubr.msk.f32.mxu0 %vm4576_vm1, %v4575_v20  ;;  %4319 = vmatprep.mubr.msk.f32.mxu1 %vm4576_vm1, %v4575_v20 }
 0x3b3   :  { %4331 = vmatprep.subr.mxu0 %v5124_v36  ;;  %4343 = vmatpush3.msra.mxu1 %v2189_v39  ;;  %v2209_v55 = vsub.f32 %v5170_v9, %v5177_v12  ;;  %v1363_v39 = vrot.slane %v5191_v47, %v1362_v38 }
 0x3b4   :  { %4344 = vmatprep.subr.mxu1 %v2196_v29 }
 0x3b5   :  { %4260 = vmatmul.mubr.f32.gmra.mxu0 %v1489_v27  ;;  %4320 = vmatmul.mubr.f32.gmra.mxu1 %v4991_v56  ;;  %v2210_v21 = vand.u32 4294901760, %v2209_v55 }
 0x3b6   :  { %4293 = vmatprep.mubr.msk.f32.mxu0 %vm4576_vm1, %v4575_v20  ;;  %4322 = vmatprep.mubr.msk.f32.mxu1 %vm4576_vm1, %v4575_v20 }
 0x3b7   :  { %4345 = vmatpush3.msra.mxu1 %v2196_v29 }
 0x3b9   :  { %4294 = vmatmul.mubr.f32.vlgmr.msra.gmra.mxu0 %v4980_v41  ;;  %4323 = vmatmul.mubr.f32.gmra.mxu1 %v5007_v5 }
 0x3ba   :  { %4296 = vmatprep.mubr.msk.f32.mxu0 %vm4576_vm1, %v4575_v20  ;;  %4325 = vmatprep.mubr.msk.f32.mxu1 %vm4576_vm1, %v4575_v20 }
 0x3bb   :  { %4332 = vmatpush3.msra.mxu0 %v5124_v36 }
 0x3bc   :  { %4333 = vmatprep.subr.mxu0 %v5133_v44 }
 0x3bd   :  { %4297 = vmatmul.mubr.f32.gmra.mxu0 %v4991_v56  ;;  %4326 = vmatmul.mubr.f32.gmra.mxu1 %v5023_v16 }
 0x3be   :  { %4299 = vmatprep.mubr.msk.f32.mxu0 %vm4576_vm1, %v4575_v20  ;;  %4328 = vmatprep.mubr.msk.f32.mxu1 %vm4576_vm1, %v4575_v20 }
 0x3bf   :  { %4334 = vmatpush3.msra.mxu0 %v5133_v44 }
 0x3c1   :  { %4300 = vmatmul.mubr.f32.gmra.mxu0 %v5007_v5  ;;  %4329 = vmatmul.mubr.f32.gmra.mxu1 %v5037_v31 }
 0x3c2   :  { %4302 = vmatprep.mubr.msk.f32.mxu0 %vm4576_vm1, %v4575_v20 }
 0x3c5   :  { %4303 = vmatmul.mubr.f32.gmra.mxu0 %v5023_v16 }
 0x3c6   :  { %4305 = vmatprep.mubr.msk.f32.mxu0 %vm4576_vm1, %v4575_v20  ;;  %v2062_v20 = vld [vmem:[%s5452_s2 + $0x48] sm:$0xff] }
 0x3c7   :  { %v5146_v50 = vand.u32 4294901760, %v2062_v20 }
 0x3c9   :  { %4306 = vmatmul.mubr.f32.gmra.mxu0 %v5037_v31  ;;  %v5158_v59 = vsub.f32 %v2062_v20, %v5146_v50  ;;  %4335 = vmatprep.subr.mxu0 %v5146_v50 }
 0x3ca   :  { %4336 = vmatpush3.msra.mxu0 %v5146_v50 }
 0x3cb   :  { %v5167_v41 = vand.u32 4294901760, %v5158_v59  ;;  %4337 = vmatprep.subr.mxu0 %v5161_v45 }
 0x3cc   :  { %4338 = vmatpush3.msra.mxu0 %v5161_v45 }
 0x3cd   :  { %v2202_v48 = vsub.f32 %v5158_v59, %v5167_v41  ;;  %4353 = vmatprep.subr.mxu0 %v5131_v43 }
 0x3cf   :  { %v2203_v15 = vand.u32 4294901760, %v2202_v48 }
 0x3d1   :  { %4346 = vmatprep.subr.mxu1 %v2203_v15 }
 0x3d2   :  { %4347 = vmatpush3.msra.mxu1 %v2203_v15 }
 0x3d3   :  { %4348 = vmatprep.subr.mxu1 %v2210_v21 }
 0x3d4   :  { %4349 = vmatpush3.msra.mxu1 %v2210_v21 }
 0x3d5   :  { %4364 = vmatprep.subr.mxu1 %v5124_v36 }
 0x449   :  { %v5183_v56 = vpop.f32.mrf.mxu1 }
 0x44b   :  { %v4226_v57 = vpop.f32.mrf.mxu1 }
 0x44d   :  { %v1591_v60 = vpop.f32.mrf.mxu1 }
 0x44f   :  { %v4229_v61 = vpop.f32.mrf.mxu1 }
 0x451   :  { %v1454_v53 = vpop.f32.mrf.mxu0  ;;  %v1597_v62 = vpop.f32.mrf.mxu1 }
 0x453   :  { %v4203_v1 = vpop.f32.mrf.mxu0  ;;  %v4232_v32 = vpop.f32.mrf.mxu1 }
 0x455   :  { %v1464_v3 = vpop.f32.mrf.mxu0  ;;  %v1603_v4 = vpop.f32.mrf.mxu1 }
 0x456   :  { %v1465_v48 = vadd.f32 %v1464_v3, %v1363_v39 }
 0x457   :  { %v4206_v37 = vpop.f32.mrf.mxu0  ;;  %v4235_v5 = vpop.f32.mrf.mxu1 }
 0x458   :  { %v1592_v1 = vadd.f32 %v1591_v60, %v1465_v48 }
 0x459   :  { %v1474_v6 = vpop.f32.mrf.mxu0  ;;  %v1609_v7 = vpop.f32.mrf.mxu1 }
 0x45a   :  { %v1475_v21 = vadd.f32 %v1474_v6, %v1363_v39 }
 0x45b   :  { %v4209_v58 = vpop.f32.mrf.mxu0  ;;  %v4238_v8 = vpop.f32.mrf.mxu1 }
 0x45c   :  { %v1598_v8 = vadd.f32 %v1597_v62, %v1475_v21 }
 0x45d   :  { %v1484_v33 = vpop.f32.mrf.mxu0  ;;  %v5185_v13 = vpop.f32.mrf.mxu1 }
 0x45e   :  { %v1485_v5 = vadd.f32 %v1484_v33, %v1363_v39 }
 0x45f   :  { %v4212_v14 = vpop.f32.mrf.mxu0  ;;  %v4272_v0 = vpop.f32.mrf.mxu1 }
 0x460   :  { %v1455_v14 = vadd.f32 %v1454_v53, %v1363_v39 }
 0x461   :  { %v1494_v16 = vpop.f32.mrf.mxu0  ;;  %v1802_v17 = vpop.f32.mrf.mxu1 }
 0x462   :  { %v1586_v38 = vadd.f32 %v5183_v56, %v1455_v14 }
 0x463   :  { %v4215_v18 = vpop.f32.mrf.mxu0  ;;  %v4275_v19 = vpop.f32.mrf.mxu1 }
 0x465   :  { %v1689_v23 = vpop.f32.mrf.mxu0  ;;  %v1810_v26 = vpop.f32.mrf.mxu1 }
 0x467   :  { %v4249_v30 = vpop.f32.mrf.mxu0  ;;  %v4278_v31 = vpop.f32.mrf.mxu1 }
 0x469   :  { %v1696_v35 = vpop.f32.mrf.mxu0  ;;  %v1818_v24 = vpop.f32.mrf.mxu1 }
 0x46a   :  { %v1697_v58 = vadd.f32 %v1696_v35, %v1592_v1 }
 0x46b   :  { %v4252_v27 = vpop.f32.mrf.mxu0  ;;  %v4281_v28 = vpop.f32.mrf.mxu1 }
 0x46c   :  { %v1495_v27 = vadd.f32 %v1494_v16, %v1363_v39  ;;  %v1604_v28 = vadd.f32 %v1603_v4, %v1485_v5  ;;  %v1803_v3 = vadd.f32 %v1802_v17, %v1697_v58 }
 0x46d   :  { %v1703_v22 = vpop.f32.mrf.mxu0  ;;  %v1826_v34 = vpop.f32.mrf.mxu1 }
 0x46e   :  { %v1704_v19 = vadd.f32 %v1703_v22, %v1598_v8  ;;  %v1610_v62 = vadd.f32 %v1609_v7, %v1495_v27 }
 0x46f   :  { %v4255_v52 = vpop.f32.mrf.mxu0  ;;  %v4284_v25 = vpop.f32.mrf.mxu1 }
 0x471   :  { %v1710_v20 = vpop.f32.mrf.mxu0  ;;  %v2008_v51 = vpop.f32.mrf.mxu1 }
 0x472   :  { %v1711_v25 = vadd.f32 %v1710_v20, %v1604_v28 }
 0x473   :  { %v4258_v40 = vpop.f32.mrf.mxu0  ;;  %v4318_v29 = vpop.f32.mrf.mxu1 }
 0x474   :  { %v1811_v40 = vadd.f32 %v1810_v26, %v1704_v19  ;;  %v1690_v29 = vadd.f32 %v1689_v23, %v1586_v38  ;;  %v1819_v16 = vadd.f32 %v1818_v24, %v1711_v25 }
 0x475   :  { %v1717_v15 = vpop.f32.mrf.mxu0  ;;  %v2014_v55 = vpop.f32.mrf.mxu1 }
 0x476   :  { %v1718_v22 = vadd.f32 %v1717_v15, %v1610_v62  ;;  %v1795_v4 = vadd.f32 %v5185_v13, %v1690_v29 }
 0x477   :  { %v4261_v57 = vpop.f32.mrf.mxu0  ;;  %v4321_v61 = vpop.f32.mrf.mxu1 }
 0x478   :  { %v1827_v23 = vadd.f32 %v1826_v34, %v1718_v22 }
 0x479   :  { %v1909_v32 = vpop.f32.mrf.mxu0  ;;  %v2020_v37 = vpop.f32.mrf.mxu1 }
 0x47a   :  { %v1910_v1 = vadd.f32 %v1909_v32, %v1795_v4  ;;  %v2620_v4 = vld [vmem:[%s5452_s2 + $0x68] sm:$0xff] }
 0x47b   :  { %v4295_v0 = vpop.f32.mrf.mxu0  ;;  %v4324_v18 = vpop.f32.mrf.mxu1 }
 0x47c   :  { %v2009_v15 = vadd.f32 %v2008_v51, %v1910_v1  ;;  %v5245_v1 = vand.u32 4294901760, %v2620_v4 }
 0x47d   :  { %v1915_v30 = vpop.f32.mrf.mxu0  ;;  %v2026_v31 = vpop.f32.mrf.mxu1 }
 0x47e   :  { %v1916_v60 = vadd.f32 %v1915_v30, %v1803_v3 }
 0x47f   :  { %v4298_v6 = vpop.f32.mrf.mxu0  ;;  %v4327_v52 = vpop.f32.mrf.mxu1 }
 0x480   :  { %v2015_v57 = vadd.f32 %v2014_v55, %v1916_v60 }
 0x481   :  { %v1921_v33 = vpop.f32.mrf.mxu0  ;;  %v2032_v35 = vpop.f32.mrf.mxu1 }
 0x482   :  { %v1922_v53 = vadd.f32 %v1921_v33, %v1811_v40  ;;  %v2038_v5 = vrot.slane %v2015_v57, 2 }
 0x483   :  { %v4301_v48 = vpop.f32.mrf.mxu0  ;;  %v4330_v21 = vpop.f32.mrf.mxu1 }
 0x484   :  { %v2021_v61 = vadd.f32 %v2020_v37, %v1922_v53 }
 0x485   :  { %v1927_v17 = vpop.f32.mrf.mxu0 }
 0x486   :  { %v2039_v56 = vrot.slane %v2021_v61, 2  ;;  %v1928_v39 = vadd.f32 %v1927_v17, %v1819_v16  ;;  %v2046_v8 = vrot.slane %v2021_v61, 4  ;;  %v2611_v61 = vsub.s32 5, %v4700_v10  ;;  %v2621_v16 = vld [vmem:[%s5452_s2 + $0x70] sm:$0xff] }
 0x487   :  { %v4304_v20 = vpop.f32.mrf.mxu0 }
 0x488   :  { %v2027_v26 = vadd.f32 %v2026_v31, %v1928_v39  ;;  %v2040_v7 = vsel %vm527_vm3, %v2038_v5, %v2039_v56  ;;  %v2044_v37 = vadd.f32 %v2039_v56, %v2015_v57  ;;  %v5243_v39 = vand.u32 4294901760, %v2621_v16 }
 0x489   :  { %v1933_v58 = vpop.f32.mrf.mxu0  ;;  %v2043_v18 = vadd.f32 %v2040_v7, %v2009_v15 }
 0x48a   :  { %v2047_v14 = vrot.slane %v2027_v26, 4  ;;  %v1934_v0 = vadd.f32 %v1933_v58, %v1827_v23  ;;  %v2054_v30 = vrot.slane %v2027_v26, 6  ;;  %v5251_v58 = vsub.f32 %v2621_v16, %v5243_v39 }
 0x48b   :  { %v4307_v55 = vpop.f32.mrf.mxu0 }
 0x48c   :  { %v2048_v24 = vsel %vm535_vm2, %v2046_v8, %v2047_v14  ;;  %v2033_v13 = vadd.f32 %v2032_v35, %v1934_v0  ;;  %v2052_v19 = vadd.f32 %v2047_v14, %v2044_v37  ;;  %v5255_v8 = vsub.f32 %v2620_v4, %v5245_v1 }
 0x48d   :  { %v2051_v27 = vadd.f32 %v2048_v24, %v2043_v18  ;;  %v2612_v0 = vrot.slane %v5191_v47, %v2611_v61  ;;  %v5264_v55 = vand.u32 4294901760, %v5251_v58 }
 0x48e   :  { %v2055_v32 = vrot.slane %v2033_v13, 6  ;;  %v5268_v37 = vand.u32 4294901760, %v5255_v8 }
 0x48f   :  { %v2767_v13 = vsub.f32 %v5251_v58, %v5264_v55 }
 0x490   :  { %v2056_v31 = vsel %vm533_vm4, %v2054_v30, %v2055_v32  ;;  %v2060_v34 = vadd.f32 %v2055_v32, %v2052_v19  ;;  %v2774_v18 = vsub.f32 %v5255_v8, %v5268_v37 }
 0x491   :  { %v2059_v28 = vadd.f32 %v2056_v31, %v2051_v27  ;;  %v2768_v30 = vand.u32 4294901760, %v2767_v13  ;;  %v2619_v27 = vld [vmem:[%s5452_s2 + $0x60] sm:$0xff] }
 0x492   :  { %v2069_v3 = vsel %vm598_vm5, %v2060_v34, 0  ;;  %v2775_v32 = vand.u32 4294901760, %v2774_v18  ;;  %v5284_v31 = vand.u32 4294901760, %v2619_v27 }
 0x493   :  { %v2150_v38 = vand.u32 4294901760, %v2069_v3  ;;  %v2066_v6 = vsel %vm598_vm5, %v2059_v28, 0 }
 0x494   :  { %v2140_v51 = vand.u32 4294901760, %v2066_v6  ;;  %v2779_v34 = vsub.f32 %v2619_v27, %v5284_v31 }
 0x495   :  { %v2151_v52 = vsub.f32 %v2069_v3, %v2150_v38 }
 0x496   :  { %4350 = vmatprep.mubr.f32.mxu1 %v2140_v51  ;;  %v2141_v25 = vsub.f32 %v2066_v6, %v2140_v51  ;;  %v5289_v28 = vand.u32 4294901760, %v2779_v34 }
 0x497   :  { %4351 = vmatmul.mubr.f32.vlgmr.msra.gmra.mxu1 %v2150_v38  ;;  %v2152_v60 = vand.u32 4294901760, %v2151_v52 }
 0x498   :  { %4365 = vmatpush3.msra.mxu1 %v5124_v36  ;;  %v2142_v40 = vand.u32 4294901760, %v2141_v25  ;;  %v2781_v3 = vsub.f32 %v2779_v34, %v5289_v28 }
 0x499   :  { %4366 = vmatprep.subr.mxu1 %v5133_v44  ;;  %v2153_v33 = vsub.f32 %v2151_v52, %v2152_v60 }
 0x49a   :  { %4367 = vmatpush3.msra.mxu1 %v5133_v44  ;;  %4372 = vmatprep.mubr.f32.mxu1 %v2142_v40  ;;  %v2143_v29 = vsub.f32 %v2141_v25, %v2142_v40 }
 0x49b   :  { %4368 = vmatprep.subr.mxu1 %v5146_v50  ;;  %v2154_v62 = vand.u32 4294901760, %v2153_v33 }
 0x49c   :  { %4369 = vmatpush3.msra.mxu1 %v5146_v50  ;;  %v2144_v35 = vand.u32 4294901760, %v2143_v29 }
 0x49d   :  { %4370 = vmatprep.subr.mxu1 %v5161_v45 }
 0x49e   :  { %4371 = vmatpush3.msra.mxu1 %v5161_v45  ;;  %4339 = vmatprep.mubr.f32.mxu0 %v2144_v35 }
 0x49f   :  { %4373 = vmatmul.mubr.f32.vlgmr.msra.gmra.mxu1 %v2152_v60  ;;  %4386 = vmatprep.subr.mxu1 %v5124_v36 }
 0x4a0   :  { %4340 = vmatmul.mubr.f32.vlgmr.msra.gmra.mxu0 %v2154_v62  ;;  %4387 = vmatpush3.msra.mxu1 %v5124_v36 }
 0x4a1   :  { %4354 = vmatpush3.msra.mxu0 %v5131_v43  ;;  %4394 = vmatprep.mubr.f32.mxu1 %v2140_v51 }
 0x4a2   :  { %4355 = vmatprep.subr.mxu0 %v5144_v49  ;;  %4361 = vmatprep.mubr.f32.mxu0 %v2141_v25 }
 0x4a3   :  { %4388 = vmatprep.subr.mxu1 %v5133_v44  ;;  %4356 = vmatpush3.msra.mxu0 %v5144_v49 }
 0x4a4   :  { %4389 = vmatpush3.msra.mxu1 %v5133_v44  ;;  %4357 = vmatprep.subr.mxu0 %v5158_v59 }
 0x4a5   :  { %4390 = vmatprep.subr.mxu1 %v5146_v50  ;;  %4358 = vmatpush3.msra.mxu0 %v5158_v59 }
 0x4a6   :  { %4391 = vmatpush3.msra.mxu1 %v5146_v50  ;;  %4359 = vmatprep.subr.mxu0 %v5170_v9 }
 0x4a7   :  { %4392 = vmatprep.subr.mxu1 %v5161_v45  ;;  %4360 = vmatpush3.msra.mxu0 %v5170_v9 }
 0x4a8   :  { %4393 = vmatpush3.msra.mxu1 %v5161_v45  ;;  %4362 = vmatmul.mubr.f32.vlgmr.msra.gmra.mxu0 %v2151_v52 }
 0x4a9   :  { %4375 = vmatprep.subr.mxu0 %v5140_v46  ;;  %4395 = vmatmul.mubr.f32.vlgmr.msra.gmra.mxu1 %v2150_v38 }
 0x4aa   :  { %4376 = vmatpush3.msra.mxu0 %v5140_v46  ;;  %4383 = vmatprep.mubr.f32.mxu0 %v2140_v51 }
 0x4ab   :  { %4377 = vmatprep.subr.mxu0 %v5155_v42 }
 0x4ac   :  { %4378 = vmatpush3.msra.mxu0 %v5155_v42 }
 0x4ad   :  { %4379 = vmatprep.subr.mxu0 %v5167_v41 }
 0x4ae   :  { %4380 = vmatpush3.msra.mxu0 %v5167_v41 }
 0x4af   :  { %4381 = vmatprep.subr.mxu0 %v5177_v12 }
 0x4b0   :  { %4382 = vmatpush3.msra.mxu0 %v5177_v12  ;;  %v2622_v12 = vld [vmem:[%s5452_s2 + $0x78] sm:$0xff] }
 0x4b1   :  { %4384 = vmatmul.mubr.f32.vlgmr.msra.gmra.mxu0 %v2150_v38  ;;  %v5241_v56 = vand.u32 4294901760, %v2622_v12  ;;  %v2782_v38 = vand.u32 4294901760, %v2781_v3 }
 0x4b3   :  { %v5248_v23 = vsub.f32 %v2622_v12, %v5241_v56  ;;  %4397 = vmatprep.subr.mxu0 %v5241_v56 }
 0x4b4   :  { %4398 = vmatpush3.msra.mxu0 %v5241_v56 }
 0x4b5   :  { %v5261_v15 = vand.u32 4294901760, %v5248_v23  ;;  %4399 = vmatprep.subr.mxu0 %v5243_v39 }
 0x4b6   :  { %4400 = vmatpush3.msra.mxu0 %v5243_v39 }
 0x4b7   :  { %v2760_v24 = vsub.f32 %v5248_v23, %v5261_v15  ;;  %4401 = vmatprep.subr.mxu0 %v5245_v1 }
 0x4b8   :  { %4402 = vmatpush3.msra.mxu0 %v5245_v1 }
 0x4b9   :  { %v2761_v19 = vand.u32 4294901760, %v2760_v24  ;;  %4403 = vmatprep.subr.mxu0 %v5284_v31 }
 0x4ba   :  { %4404 = vmatpush3.msra.mxu0 %v5284_v31 }
 0x4bb   :  { %4408 = vmatprep.subr.mxu1 %v2761_v19  ;;  %4419 = vmatprep.subr.mxu0 %v5248_v23 }
 0x4bc   :  { %4409 = vmatpush3.msra.mxu1 %v2761_v19 }
 0x4bd   :  { %4410 = vmatprep.subr.mxu1 %v2768_v30 }
 0x4be   :  { %4411 = vmatpush3.msra.mxu1 %v2768_v30 }
 0x4bf   :  { %4412 = vmatprep.subr.mxu1 %v2775_v32 }
 0x4c0   :  { %4413 = vmatpush3.msra.mxu1 %v2775_v32 }
 0x4c1   :  { %4414 = vmatprep.subr.mxu1 %v2782_v38 }
 0x4c2   :  { %4415 = vmatpush3.msra.mxu1 %v2782_v38 }
 0x4c3   :  { %4430 = vmatprep.subr.mxu1 %v5241_v56 }
 0x557   :  { %v4352_v43 = vpop.f32.mrf.mxu1 }
 0x559   :  { %v2247_v50 = vpop.f32.mrf.mxu1 }
 0x55f   :  { %v4374_v45 = vpop.f32.mrf.mxu1 }
 0x560   :  { %v4341_v36 = vpop.f32.mrf.mxu0 }
 0x561   :  { %v2254_v46 = vadd.f32 %v4352_v43, %v4341_v36  ;;  %v2417_v48 = vpop.f32.mrf.mxu1 }
 0x562   :  { %v2146_v44 = vpop.f32.mrf.mxu0 }
 0x563   :  { %v2248_v9 = vadd.f32 %v2247_v50, %v2146_v44 }
 0x568   :  { %v4363_v49 = vpop.f32.mrf.mxu0 }
 0x569   :  { %v2341_v53 = vadd.f32 %v4363_v49, %v2254_v46  ;;  %v4396_v22 = vpop.f32.mrf.mxu1 }
 0x56a   :  { %v2333_v59 = vpop.f32.mrf.mxu0 }
 0x56b   :  { %v2334_v42 = vadd.f32 %v2333_v59, %v2248_v9  ;;  %v2426_v21 = vadd.f32 %v4374_v45, %v2341_v53  ;;  %v2589_v7 = vpop.f32.mrf.mxu1 }
 0x56d   :  { %v2418_v57 = vadd.f32 %v2417_v48, %v2334_v42  ;;  %v2631_v48 = vsub.s32 6, %v4700_v10 }
 0x571   :  { %v4385_v41 = vpop.f32.mrf.mxu0 }
 0x572   :  { %v2515_v17 = vadd.f32 %v4385_v41, %v2426_v21 }
 0x573   :  { %v2508_v20 = vpop.f32.mrf.mxu0 }
 0x574   :  { %v2596_v5 = vadd.f32 %v4396_v22, %v2515_v17  ;;  %v2509_v26 = vadd.f32 %v2508_v20, %v2418_v57  ;;  %v2632_v22 = vrot.slane %v5191_v47, %v2631_v48 }
 0x576   :  { %v2590_v14 = vadd.f32 %v2589_v7, %v2509_v26  ;;  %2603 = vrot.lane.b32.xlu1 %v2596_v5, %s4578_s26 }
 0x578   :  { %2601 = vrot.lane.b32.xlu0 %v2590_v14, %s4578_s26 }
 0x57a   :  { %2614 = vrot.lane.b32.xlu1 %v2612_v0, %s4578_s26 }
 0x5e8   :  { %v2604_v6 = vpop.permute.xlu1 %2603 }
 0x5e9   :  { %v2608_v52 = vadd.f32 %v2604_v6, %v4681_v63 }
 0x5ea   :  { %v2602_v51 = vpop.permute.xlu0 %2601 }
 0x5eb   :  { %v2607_v25 = vadd.f32 %v2602_v51, %v4685_v2  ;;  %v2626_v51 = vld [vmem:[%s5452_s2 + $0x98] sm:$0xff] }
 0x5ec   :  { %v2615_v60 = vpop.permute.xlu1 %2614 }
 0x5ed   :  { %v2617_v40 = vadd.f32 %v2615_v60, %v2607_v25  ;;  %v2618_v29 = vadd.f32 %v2615_v60, %v2608_v52  ;;  %v2625_v52 = vld [vmem:[%s5452_s2 + $0x90] sm:$0xff]  ;;  %v2624_v25 = vld [vmem:[%s5452_s2 + $0x88] sm:$0xff]  ;;  %v5347_v60 = vand.u32 4294901760, %v2626_v51 }
 0x5ef   :  { %v2627_v33 = vmax.f32 %v2617_v40, 0.0  ;;  %v2628_v35 = vmax.f32 %v2618_v29, 0.0  ;;  %v5349_v40 = vand.u32 4294901760, %v2625_v52  ;;  %v5351_v29 = vand.u32 4294901760, %v2624_v25 }
 0x5f1   :  { %2637 = vrot.lane.b32.xlu1 %v2628_v35, %s4578_s26  ;;  %2635 = vrot.lane.b32.xlu0 %v2627_v33, %s4578_s26  ;;  %v5354_v33 = vsub.f32 %v2626_v51, %v5347_v60  ;;  %v5357_v35 = vsub.f32 %v2625_v52, %v5349_v40 }
 0x663   :  { %v2638_v62 = vpop.permute.xlu1 %2637  ;;  %v2636_v36 = vpop.permute.xlu0 %2635 }
 0x664   :  { %v2641_v43 = vsel %vm598_vm5, %v2638_v62, 0  ;;  %v2639_v44 = vsel %vm598_vm5, %v2636_v36, 0  ;;  %v5360_v62 = vsub.f32 %v2624_v25, %v5351_v29  ;;  %v5365_v36 = vand.u32 4294901760, %v5354_v33 }
 0x665   :  { %v2722_v49 = vand.u32 4294901760, %v2641_v43  ;;  %v2712_v50 = vand.u32 4294901760, %v2639_v44 }
 0x667   :  { %v2723_v63 = vsub.f32 %v2641_v43, %v2722_v49  ;;  %v2713_v46 = vsub.f32 %v2639_v44, %v2712_v50  ;;  %4416 = vmatprep.mubr.f32.mxu1 %v2712_v50  ;;  %v5368_v43 = vand.u32 4294901760, %v5357_v35  ;;  %v5371_v44 = vand.u32 4294901760, %v5360_v62 }
 0x668   :  { %4417 = vmatmul.mubr.f32.vlgmr.msra.gmra.mxu1 %v2722_v49 }
 0x669   :  { %v2724_v2 = vand.u32 4294901760, %v2723_v63  ;;  %4431 = vmatpush3.msra.mxu1 %v5241_v56  ;;  %v2714_v59 = vand.u32 4294901760, %v2713_v46 }
 0x66a   :  { %4432 = vmatprep.subr.mxu1 %v5243_v39 }
 0x66b   :  { %v2725_v45 = vsub.f32 %v2723_v63, %v2724_v2  ;;  %4433 = vmatpush3.msra.mxu1 %v5243_v39  ;;  %4438 = vmatprep.mubr.f32.mxu1 %v2714_v59  ;;  %v2715_v9 = vsub.f32 %v2713_v46, %v2714_v59 }
 0x66c   :  { %4434 = vmatprep.subr.mxu1 %v5245_v1 }
 0x66d   :  { %v2726_v53 = vand.u32 4294901760, %v2725_v45  ;;  %4435 = vmatpush3.msra.mxu1 %v5245_v1  ;;  %v2716_v42 = vand.u32 4294901760, %v2715_v9  ;;  %v2623_v45 = vld [vmem:[%s5452_s2 + $0x80] sm:$0xff] }
 0x66e   :  { %4436 = vmatprep.subr.mxu1 %v5284_v31  ;;  %v5386_v9 = vand.u32 4294901760, %v2623_v45 }
 0x66f   :  { %4437 = vmatpush3.msra.mxu1 %v5284_v31  ;;  %4405 = vmatprep.mubr.f32.mxu0 %v2716_v42 }
 0x670   :  { %4439 = vmatmul.mubr.f32.vlgmr.msra.gmra.mxu1 %v2724_v2  ;;  %4452 = vmatprep.subr.mxu1 %v5241_v56 }
 0x671   :  { %4406 = vmatmul.mubr.f32.vlgmr.msra.gmra.mxu0 %v2726_v53  ;;  %4453 = vmatpush3.msra.mxu1 %v5241_v56  ;;  %v5389_v53 = vsub.f32 %v2623_v45, %v5386_v9 }
 0x672   :  { %4420 = vmatpush3.msra.mxu0 %v5248_v23  ;;  %4460 = vmatprep.mubr.f32.mxu1 %v2712_v50 }
 0x673   :  { %4421 = vmatprep.subr.mxu0 %v5251_v58  ;;  %4427 = vmatprep.mubr.f32.mxu0 %v2713_v46  ;;  %v5394_v42 = vand.u32 4294901760, %v5389_v53 }
 0x674   :  { %4454 = vmatprep.subr.mxu1 %v5243_v39  ;;  %4422 = vmatpush3.msra.mxu0 %v5251_v58 }
 0x675   :  { %4455 = vmatpush3.msra.mxu1 %v5243_v39  ;;  %4423 = vmatprep.subr.mxu0 %v5255_v8  ;;  %v3360_v48 = vsub.f32 %v5389_v53, %v5394_v42 }
 0x676   :  { %4456 = vmatprep.subr.mxu1 %v5245_v1  ;;  %4424 = vmatpush3.msra.mxu0 %v5255_v8 }
 0x677   :  { %4457 = vmatpush3.msra.mxu1 %v5245_v1  ;;  %4425 = vmatprep.subr.mxu0 %v2779_v34 }
 0x678   :  { %4458 = vmatprep.subr.mxu1 %v5284_v31  ;;  %4426 = vmatpush3.msra.mxu0 %v2779_v34 }
 0x679   :  { %4459 = vmatpush3.msra.mxu1 %v5284_v31  ;;  %4428 = vmatmul.mubr.f32.vlgmr.msra.gmra.mxu0 %v2723_v63  ;;  %v3353_v63 = vsub.f32 %v5360_v62, %v5371_v44 }
 0x67a   :  { %4441 = vmatprep.subr.mxu0 %v5261_v15  ;;  %4461 = vmatmul.mubr.f32.vlgmr.msra.gmra.mxu1 %v2722_v49 }
 0x67b   :  { %4442 = vmatpush3.msra.mxu0 %v5261_v15  ;;  %4449 = vmatprep.mubr.f32.mxu0 %v2712_v50  ;;  %v3346_v50 = vsub.f32 %v5357_v35, %v5368_v43  ;;  %v3354_v59 = vand.u32 4294901760, %v3353_v63 }
 0x67c   :  { %4443 = vmatprep.subr.mxu0 %v5264_v55 }
 0x67d   :  { %4444 = vmatpush3.msra.mxu0 %v5264_v55  ;;  %v3347_v2 = vand.u32 4294901760, %v3346_v50 }
 0x67e   :  { %4445 = vmatprep.subr.mxu0 %v5268_v37 }
 0x67f   :  { %4446 = vmatpush3.msra.mxu0 %v5268_v37 }
 0x680   :  { %4447 = vmatprep.subr.mxu0 %v5289_v28 }
 0x681   :  { %4448 = vmatpush3.msra.mxu0 %v5289_v28 }
 0x682   :  { %4450 = vmatmul.mubr.f32.vlgmr.msra.gmra.mxu0 %v2722_v49  ;;  %4463 = vmatprep.subr.mxu0 %v5347_v60  ;;  %v3339_v49 = vsub.f32 %v5354_v33, %v5365_v36 }
 0x683   :  { %4464 = vmatpush3.msra.mxu0 %v5347_v60 }
 0x684   :  { %4465 = vmatprep.subr.mxu0 %v5349_v40  ;;  %v3340_v46 = vand.u32 4294901760, %v3339_v49 }
 0x685   :  { %4466 = vmatpush3.msra.mxu0 %v5349_v40 }
 0x686   :  { %4467 = vmatprep.subr.mxu0 %v5351_v29  ;;  %4474 = vmatprep.subr.mxu1 %v3340_v46 }
 0x687   :  { %4468 = vmatpush3.msra.mxu0 %v5351_v29  ;;  %4475 = vmatpush3.msra.mxu1 %v3340_v46 }
 0x688   :  { %4476 = vmatprep.subr.mxu1 %v3347_v2  ;;  %4469 = vmatprep.subr.mxu0 %v5386_v9 }
 0x689   :  { %4477 = vmatpush3.msra.mxu1 %v3347_v2  ;;  %4470 = vmatpush3.msra.mxu0 %v5386_v9 }
 0x68a   :  { %4478 = vmatprep.subr.mxu1 %v3354_v59  ;;  %4485 = vmatprep.subr.mxu0 %v5354_v33 }
 0x68b   :  { %4479 = vmatpush3.msra.mxu1 %v3354_v59 }
 0x728   :  { %v4418_v41 = vpop.f32.mrf.mxu1 }
 0x72a   :  { %v2819_v4 = vpop.f32.mrf.mxu1 }
 0x730   :  { %v4440_v56 = vpop.f32.mrf.mxu1 }
 0x731   :  { %v4407_v21 = vpop.f32.mrf.mxu0 }
 0x732   :  { %v2729_v61 = vadd.f32 %v4407_v21, %v2632_v22  ;;  %v2989_v26 = vpop.f32.mrf.mxu1  ;;  %v3361_v21 = vand.u32 4294901760, %v3360_v48 }
 0x733   :  { %v2718_v57 = vpop.f32.mrf.mxu0 }
 0x734   :  { %v2719_v12 = vadd.f32 %v2718_v57, %v2632_v22  ;;  %v2826_v17 = vadd.f32 %v4418_v41, %v2729_v61  ;;  %4480 = vmatprep.subr.mxu1 %v3361_v21 }
 0x735   :  { %4481 = vmatpush3.msra.mxu1 %v3361_v21 }
 0x736   :  { %v2820_v20 = vadd.f32 %v2819_v4, %v2719_v12  ;;  %4496 = vmatprep.subr.mxu1 %v5347_v60  ;;  %v3200_v4 = vsub.s32 7, %v4700_v10 }
 0x739   :  { %v4429_v16 = vpop.f32.mrf.mxu0 }
 0x73a   :  { %v2913_v1 = vadd.f32 %v4429_v16, %v2826_v17  ;;  %v4462_v58 = vpop.f32.mrf.mxu1  ;;  %v5404_v17 = vld [vmem:[%s5453_s3 + $0x8] sm:$0x3]  ;;  %s4579_s3 = smov 8  }
 0x73b   :  { %v2905_v39 = vpop.f32.mrf.mxu0 }
 0x73c   :  { %v2906_v5 = vadd.f32 %v2905_v39, %v2820_v20  ;;  %v2998_v23 = vadd.f32 %v4440_v56, %v2913_v1  ;;  %v3161_v37 = vpop.f32.mrf.mxu1  ;;  %v3201_v56 = vrot.slane %v5191_v47, %v3200_v4  ;;  %v3207_v1 = vrot.slane %v5404_v17, %v521_v11 }
 0x73e   :  { %v2990_v14 = vadd.f32 %v2989_v26, %v2906_v5 }
 0x742   :  { %v4451_v7 = vpop.f32.mrf.mxu0 }
 0x743   :  { %v3087_v8 = vadd.f32 %v4451_v7, %v2998_v23 }
 0x744   :  { %v3080_v0 = vpop.f32.mrf.mxu0 }
 0x745   :  { %v3081_v15 = vadd.f32 %v3080_v0, %v2990_v14  ;;  %v3168_v55 = vadd.f32 %v4462_v58, %v3087_v8 }
 0x747   :  { %v3175_v24 = vsel %vm3174_vm6, %v3168_v55, 0.0  ;;  %v3162_v13 = vadd.f32 %v3161_v37, %v3081_v15 }
 0x748   :  { %3176 = vadd.xlane.f32.xlu1 %v3175_v24 }
 0x749   :  { %v3171_v18 = vsel %vm598_vm5, %v3162_v13, 0.0 }
 0x74a   :  { %3172 = vadd.xlane.f32.xlu0 %v3171_v18 }
 0x7d1   :  { %v3177_v19 = vpop.xlane.xlu1 %3176 }
 0x7d2   :  { %v3179_v30 = vmul.f32 0.03125, %v3177_v19 }
 0x7d3   :  { %v3173_v32 = vpop.xlane.xlu0 %3172 }
 0x7d4   :  { %v3178_v27 = vmul.f32 0.03125, %v3173_v32  ;;  %v5332_v31 = vsub.f32 %v3168_v55, %v3179_v30 }
 0x7d6   :  { %v3180_v34 = vsub.f32 %v3162_v13, %v3178_v27  ;;  %v3183_v38 = vmul.f32 %v5332_v31, %v5332_v31 }
 0x7d8   :  { %v3182_v28 = vmul.f32 %v3180_v34, %v3180_v34  ;;  %v3187_v6 = vsel %vm3174_vm6, %v3183_v38, 0.0 }
 0x7da   :  { %v3184_v3 = vsel %vm598_vm5, %v3182_v28, 0.0 }
 0x7db   :  { %3185 = vadd.xlane.f32.xlu0 %v3184_v3  ;;  %v3215_v3 = vrot.slane %v5404_v17, %v596_v54 }
 0x7df   :  { %3188 = vadd.xlane.f32.xlu0 %v3187_v6 }
 0x864   :  { %v3186_v22 = vpop.xlane.xlu0 %3185 }
 0x865   :  { %v3190_v41 = vmul.f32 0.03125, %v3186_v22 }
 0x867   :  { %v3192_v57 = vadd.f32 1e-05, %v3190_v41 }
 0x868   :  { %v3189_v61 = vpop.xlane.xlu0 %3188 }
 0x869   :  { %4548 = vrsqrt.f32 %v3192_v57  ;;  %v3191_v12 = vmul.f32 0.03125, %v3189_v61 }
 0x86b   :  { %v3193_v16 = vadd.f32 1e-05, %v3191_v12 }
 0x86d   :  { %4550 = vrsqrt.f32 %v3193_v16 }
 0x876   :  { %v4549_v39 = vpop.eup %4548 }
 0x877   :  { %v3196_v20 = vmul.f32 %v4549_v39, %v3180_v34 }
 0x879   :  { %v3202_v5 = vmul.f32 %v3201_v56, %v3196_v20 }
 0x87a   :  { %v4551_v26 = vpop.eup %4550 }
 0x87b   :  { %v3208_v23 = vadd.f32 %v3207_v1, %v3202_v5  ;;  %v3197_v58 = vmul.f32 %v4551_v26, %v5332_v31 }
 0x87d   :  { %v3210_v7 = vmax.f32 %v3208_v23, 0.0  ;;  %v3203_v8 = vmul.f32 %v3201_v56, %v3197_v58 }
 0x87f   :  { %v3217_v14 = vsel %vm598_vm5, %v3210_v7, 0  ;;  %v3209_v0 = vadd.f32 %v3207_v1, %v3203_v8 }
 0x880   :  { %v3291_v15 = vand.u32 4294901760, %v3217_v14 }
 0x881   :  { %v3211_v55 = vmax.f32 %v3209_v0, 0.0 }
 0x882   :  { %4482 = vmatprep.mubr.f32.mxu1 %v3291_v15  ;;  %v3292_v47 = vsub.f32 %v3217_v14, %v3291_v15 }
 0x883   :  { %v3220_v37 = vsel %vm598_vm5, %v3211_v55, 0 }
 0x884   :  { %v3301_v24 = vand.u32 4294901760, %v3220_v37  ;;  %v3293_v13 = vand.u32 4294901760, %v3292_v47 }
 0x886   :  { %v3302_v11 = vsub.f32 %v3220_v37, %v3301_v24  ;;  %4483 = vmatmul.mubr.f32.vlgmr.msra.gmra.mxu1 %v3301_v24  ;;  %v3294_v18 = vsub.f32 %v3292_v47, %v3293_v13 }
 0x887   :  { %4497 = vmatpush3.msra.mxu1 %v5347_v60  ;;  %4504 = vmatprep.mubr.f32.mxu1 %v3293_v13 }
 0x888   :  { %4498 = vmatprep.subr.mxu1 %v5349_v40  ;;  %v3295_v19 = vand.u32 4294901760, %v3294_v18  ;;  %v3303_v30 = vand.u32 4294901760, %v3302_v11 }
 0x889   :  { %4499 = vmatpush3.msra.mxu1 %v5349_v40 }
 0x88a   :  { %4500 = vmatprep.subr.mxu1 %v5351_v29  ;;  %4471 = vmatprep.mubr.f32.mxu0 %v3295_v19  ;;  %v3304_v32 = vsub.f32 %v3302_v11, %v3303_v30 }
 0x88b   :  { %4501 = vmatpush3.msra.mxu1 %v5351_v29 }
 0x88c   :  { %4502 = vmatprep.subr.mxu1 %v5386_v9  ;;  %v3305_v27 = vand.u32 4294901760, %v3304_v32 }
 0x88d   :  { %4503 = vmatpush3.msra.mxu1 %v5386_v9 }
 0x88e   :  { %4505 = vmatmul.mubr.f32.vlgmr.msra.gmra.mxu1 %v3303_v30  ;;  %4518 = vmatprep.subr.mxu1 %v5347_v60 }
 0x88f   :  { %4472 = vmatmul.mubr.f32.vlgmr.msra.gmra.mxu0 %v3305_v27  ;;  %4519 = vmatpush3.msra.mxu1 %v5347_v60 }
 0x890   :  { %4486 = vmatpush3.msra.mxu0 %v5354_v33  ;;  %4526 = vmatprep.mubr.f32.mxu1 %v3291_v15 }
 0x891   :  { %4487 = vmatprep.subr.mxu0 %v5357_v35  ;;  %4493 = vmatprep.mubr.f32.mxu0 %v3292_v47 }
 0x892   :  { %4520 = vmatprep.subr.mxu1 %v5349_v40  ;;  %4488 = vmatpush3.msra.mxu0 %v5357_v35 }
 0x893   :  { %4521 = vmatpush3.msra.mxu1 %v5349_v40  ;;  %4489 = vmatprep.subr.mxu0 %v5360_v62 }
 0x894   :  { %4522 = vmatprep.subr.mxu1 %v5351_v29  ;;  %4490 = vmatpush3.msra.mxu0 %v5360_v62 }
 0x895   :  { %4523 = vmatpush3.msra.mxu1 %v5351_v29  ;;  %4491 = vmatprep.subr.mxu0 %v5389_v53 }
 0x896   :  { %4524 = vmatprep.subr.mxu1 %v5386_v9  ;;  %4492 = vmatpush3.msra.mxu0 %v5389_v53 }
 0x897   :  { %4525 = vmatpush3.msra.mxu1 %v5386_v9  ;;  %4494 = vmatmul.mubr.f32.vlgmr.msra.gmra.mxu0 %v3302_v11 }
 0x898   :  { %4507 = vmatprep.subr.mxu0 %v5365_v36  ;;  %4527 = vmatmul.mubr.f32.vlgmr.msra.gmra.mxu1 %v3301_v24 }
 0x899   :  { %4508 = vmatpush3.msra.mxu0 %v5365_v36  ;;  %4515 = vmatprep.mubr.f32.mxu0 %v3291_v15 }
 0x89a   :  { %4509 = vmatprep.subr.mxu0 %v5368_v43 }
 0x89b   :  { %4510 = vmatpush3.msra.mxu0 %v5368_v43 }
 0x89c   :  { %4511 = vmatprep.subr.mxu0 %v5371_v44 }
 0x89d   :  { %4512 = vmatpush3.msra.mxu0 %v5371_v44 }
 0x89e   :  { %4513 = vmatprep.subr.mxu0 %v5394_v42 }
 0x89f   :  { %4514 = vmatpush3.msra.mxu0 %v5394_v42 }
 0x8a0   :  { %4516 = vmatmul.mubr.f32.vlgmr.msra.gmra.mxu0 %v3301_v24 }
 0x946   :  { %v4484_v34 = vpop.f32.mrf.mxu1 }
 0x948   :  { %v3398_v51 = vpop.f32.mrf.mxu1 }
 0x94e   :  { %v4506_v52 = vpop.f32.mrf.mxu1 }
 0x94f   :  { %v4473_v31 = vpop.f32.mrf.mxu0 }
 0x950   :  { %v3568_v29 = vpop.f32.mrf.mxu1  ;;  %v3308_v33 = vadd.f32 %v4473_v31, %v3215_v3 }
 0x951   :  { %v3297_v28 = vpop.f32.mrf.mxu0 }
 0x952   :  { %v3298_v38 = vadd.f32 %v3297_v28, %v3215_v3  ;;  %v3405_v44 = vadd.f32 %v4484_v34, %v3308_v33 }
 0x954   :  { %v3399_v60 = vadd.f32 %v3398_v51, %v3298_v38 }
 0x957   :  { %v4495_v6 = vpop.f32.mrf.mxu0 }
 0x958   :  { %v4528_v35 = vpop.f32.mrf.mxu1  ;;  %v3492_v63 = vadd.f32 %v4495_v6, %v3405_v44 }
 0x959   :  { %v3484_v25 = vpop.f32.mrf.mxu0 }
 0x95a   :  { %v3485_v40 = vadd.f32 %v3484_v25, %v3399_v60  ;;  %v3740_v50 = vpop.f32.mrf.mxu1  ;;  %v3577_v2 = vadd.f32 %v4506_v52, %v3492_v63 }
 0x95c   :  { %v3569_v36 = vadd.f32 %v3568_v29, %v3485_v40 }
 0x960   :  { %v4517_v62 = vpop.f32.mrf.mxu0 }
 0x961   :  { %v3666_v59 = vadd.f32 %v4517_v62, %v3577_v2 }
 0x962   :  { %v3659_v43 = vpop.f32.mrf.mxu0 }
 0x963   :  { %v3660_v49 = vadd.f32 %v3659_v43, %v3569_v36  ;;  %v3747_v9 = vadd.f32 %v4528_v35, %v3666_v59 }
 0x965   :  { %v3741_v10 = vadd.f32 %v3740_v50, %v3660_v49 }
 0x967   :  { %v3755_v46 = vrot.slane %v3741_v10, 4  ;;  %v3751_v54 = vrot.slane %v3741_v10, 2  ;;  %v3759_v45 = vrot.slane %v3741_v10, 6 }
 0x969   :  { %3756 = vrot.lane.b32.xlu0 %v3755_v46, %s4579_s3  ;;  %3752 = vrot.lane.b32.xlu1 %v3751_v54, %s4580_s12 }
 0x96d   :  { %3760 = vrot.lane.b32.xlu1 %v3759_v45, %s4581_s13 }
 0x971   :  { %3764 = vrot.lane.b32.xlu1 %v3747_v9, %s4582_s14 }
 0x9db   :  { %v3753_v53 = vpop.permute.xlu1 %3752  ;;  %v3757_v42 = vpop.permute.xlu0 %3756 }
 0x9dc   :  { %v3768_v48 = vsel %vm3767_vm7, %v3741_v10, %v3753_v53 }
 0x9dd   :  { %v3769_v22 = vsel %vm23_vm0, %v3768_v48, %v3757_v42 }
 0x9df   :  { %v3761_v21 = vpop.permute.xlu1 %3760 }
 0x9e0   :  { %v3771_v41 = vsel %vm3770_vm8, %v3769_v22, %v3761_v21 }
 0x9e3   :  { %v3765_v57 = vpop.permute.xlu1 %3764 }
 0x9e4   :  { %v3773_v61 = vsel %vm3772_vm9, %v3771_v41, %v3765_v57 }
 0x9e5   :  { %v3775_v12 = vsel %vm3774_vm10, %v3773_v61, 0.0 }
 0x9e6   :  { %3776 = vst [vmem:[#allocation2] sm:$0x3] %v3775_v12 }
 0x9e7   :  { %4564 = shalt.err (!%p4561_p4)
}
 0x9e8   :  { %3786 = dma.vmem_to_hbm [thread:$0]  %s3784_s16, 32, %s5454_s4, [#allocation3]  }
 0x9e9   :  { %4573 = dma.done.wait [#allocation3], 32  }
 0x9ea   :  { %4574 = vsyncadd [#allocation3], 4294967264 }
 0x9eb   :  { %3790 = vsyncpa [#allocation3], 1 }

</bundles_post_ra>
